<compile_context>
chip_gen: v7x
topology: tpu7x:2x2x1
jax: 0.10.0
libtpu: 0.0.40
codegen_flags: <defaults>
</compile_context>

<pallas_src>
import math
from functools import partial

import jax
import jax.numpy as jnp
from jax import lax
from jax.experimental import pallas as pl
from jax.experimental.pallas import tpu as pltpu

LN_EPS = 1e-5


def _round_up(v, m):
    return (v + m - 1) // m * m


def _mm(a, b):
    """bf16 MXU matmul with f32 accumulation."""
    return jnp.dot(a.astype(jnp.bfloat16), b.astype(jnp.bfloat16),
                   preferred_element_type=jnp.float32)


def _mm_nt(a, b):
    """a [M,K] x b [N,K]  ->  [M,N] (contraction on last dims), bf16 in, f32 acc."""
    return lax.dot_general(a.astype(jnp.bfloat16), b.astype(jnp.bfloat16),
                           dimension_numbers=(((1,), (1,)), ((), ())),
                           preferred_element_type=jnp.float32)


def _graph_layernorm(h, w, b, mask, inv_count):
    # torch_geometric.nn.norm.LayerNorm(mode='graph'), single graph, biased var:
    # normalize over all VALID nodes & features, then per-feature affine.
    mean = jnp.sum(h * mask) * inv_count
    d = (h - mean) * mask
    var = jnp.sum(d * d) * inv_count
    return (h - mean) * lax.rsqrt(var + LN_EPS) * w + b


def estimator_layer_kernel(
    n_nodes, dim_h, num_heads,
    # data
    x_ref, src_ref, dst_ref, ea_ref,
    # GINEConv params (pre-transposed [in, out], zero-padded, bf16 weights)
    we_ref, be_ref, w1_ref, b1_ref, w2_ref, b2_ref,
    # norm1_local
    ln1l_w_ref, ln1l_b_ref,
    # self-attention (per-head stacked q/k weights, Wv folded with Wo)
    wq_ref, bq_ref, wk_ref, bk_ref, wvo_ref, battn_ref,
    # norm1_attn
    ln1a_w_ref, ln1a_b_ref,
    # feed-forward
    wf1_ref, bf1_ref, wf2_ref, bf2_ref,
    # norm2
    ln2_w_ref, ln2_b_ref,
    # output
    out_ref,
):
    x = x_ref[...]                                   # [Np, Dp] f32
    n_pad, d_pad = x.shape
    e_pad = dst_ref.shape[1]
    head_dim = dim_h // num_heads
    scale = 1.0 / math.sqrt(head_dim)
    inv_count = 1.0 / float(n_nodes * dim_h)

    xb = x.astype(jnp.bfloat16)                      # hoisted bf16 copy for all matmuls

    # validity mask of the padded node/feature region (static sizes)
    row_ok = lax.broadcasted_iota(jnp.int32, (n_pad, d_pad), 0) < n_nodes
    col_ok = lax.broadcasted_iota(jnp.int32, (n_pad, d_pad), 1) < dim_h
    mask = jnp.where(jnp.logical_and(row_ok, col_ok), 1.0, 0.0)

    # ---------------- local model: GINEConv ----------------
    # connectivity one-hots built in-register from the int32 index vectors
    gat = jnp.where(src_ref[...] ==
                    lax.broadcasted_iota(jnp.int32, (e_pad, n_pad), 1),
                    1.0, 0.0).astype(jnp.bfloat16)          # [Ep, Np]
    sct = jnp.where(lax.broadcasted_iota(jnp.int32, (n_pad, e_pad), 0) ==
                    dst_ref[...],
                    1.0, 0.0).astype(jnp.bfloat16)          # [Np, Ep]

    x_j = _mm(gat, xb)                                       # gather x[src]   [Ep, Dp]
    e_emb = _mm(ea_ref[...], we_ref[...]) + be_ref[...]      # Linear(edge_attr)
    msg = jnp.maximum(x_j + e_emb, 0.0)                      # relu(x_j + e_emb)
    aggr = _mm(sct, msg)                                     # scatter-add     [Np, Dp]
    t = x + aggr                                             # (1 + eps) * x, eps = 0
    h1 = jnp.maximum(_mm(t, w1_ref[...]) + b1_ref[...], 0.0)
    h_local = _mm(h1, w2_ref[...]) + b2_ref[...]
    h_local = x + h_local                                    # dropout (eval) = id
    h_local = _graph_layernorm(h_local, ln1l_w_ref[...], ln1l_b_ref[...],
                               mask, inv_count)

    # ---------------- self-attention (single graph) ----------------
    key_ok = lax.broadcasted_iota(jnp.int32, (n_pad, n_pad), 1) < n_nodes
    attn = jnp.zeros((n_pad, d_pad), jnp.float32)
    for h in range(num_heads):
        q_h = (_mm(xb, wq_ref[h]) + bq_ref[h]) * scale       # [Np, hd]
        k_h = _mm(xb, wk_ref[h]) + bk_ref[h]                 # [Np, hd]
        s = _mm_nt(q_h, k_h)                                 # [Np, Np]
        s = jnp.where(key_ok, s, -1e30)                      # mask padded keys
        s_max = jnp.max(s, axis=-1, keepdims=True)
        e = jnp.exp(s - s_max)
        p = e / jnp.sum(e, axis=-1, keepdims=True)
        vo_h = _mm(xb, wvo_ref[h])                           # x @ (Wv_h Wo_h) [Np, Dp]
        attn = attn + _mm(p, vo_h)                           # lane-dense accumulation
    attn = attn + battn_ref[...]                             # bo + bv @ Wo^T (folded)
    h_attn = x + attn                                        # dropout (eval) = id
    h_attn = _graph_layernorm(h_attn, ln1a_w_ref[...], ln1a_b_ref[...],
                              mask, inv_count)

    # ---------------- combine + feed-forward ----------------
    h = h_local + h_attn
    ff = jnp.maximum(_mm(h, wf1_ref[...]) + bf1_ref[...], 0.0)
    ff = _mm(ff, wf2_ref[...]) + bf2_ref[...]
    h = h + ff
    h = _graph_layernorm(h, ln2_w_ref[...], ln2_b_ref[...], mask, inv_count)

    out_ref[...] = h.astype(out_ref.dtype)


# ----------------------------------------------------------------------------
# Host-side glue: padding / pre-transposing / head folding (pure layout plumbing)
# ----------------------------------------------------------------------------
def _pad2(a, r, c):
    return jnp.pad(a, ((0, r - a.shape[0]), (0, c - a.shape[1])))


def pack_inputs(x, edge_index, edge_attr, params, num_heads):
    (we, be, w1, b1, w2, b2,
     ln1l_w, ln1l_b,
     w_in, b_in, wo, bo,
     ln1a_w, ln1a_b,
     wf1, bf1, wf2, bf2,
     ln2_w, ln2_b) = params

    N, D = x.shape
    E, De = edge_attr.shape
    H = num_heads
    hd = D // H
    Np = _round_up(N, 8)
    Dp = _round_up(D, 128)
    Ep = _round_up(E, 128)
    Fp = _round_up(2 * D, 128)
    bf = jnp.bfloat16

    def lin(w_torch, b_torch, ip, op):
        # torch Linear: y = x @ W^T + b  ->  pass W^T zero-padded to [ip, op]
        return (_pad2(w_torch.T, ip, op).astype(bf),
                _pad2(b_torch.reshape(1, -1), 1, op).astype(jnp.float32))

    def ln(w, b):
        return (_pad2(w.reshape(1, -1), 1, Dp).astype(jnp.float32),
                _pad2(b.reshape(1, -1), 1, Dp).astype(jnp.float32))

    x_p = _pad2(x, Np, Dp).astype(jnp.float32)
    ea_p = _pad2(edge_attr, Ep, De).astype(bf)
    src = edge_index[0].astype(jnp.int32)
    dst = edge_index[1].astype(jnp.int32)
    src_p = jnp.pad(src, (0, Ep - E), constant_values=0).reshape(Ep, 1)
    dst_p = jnp.pad(dst, (0, Ep - E), constant_values=-1).reshape(1, Ep)  # match no node

    we_p, be_p = lin(we, be, De, Dp)
    w1_p, b1_p = lin(w1, b1, Dp, Dp)
    w2_p, b2_p = lin(w2, b2, Dp, Dp)
    wf1_p, bf1_p = lin(wf1, bf1, Dp, Fp)
    wf2_p, bf2_p = lin(wf2, bf2, Fp, Dp)
    ln1l = ln(ln1l_w, ln1l_b)
    ln1a = ln(ln1a_w, ln1a_b)
    ln2 = ln(ln2_w, ln2_b)

    # MultiheadAttention: split in_proj per head, fold Wv with the Wo slice.
    wq_t, wk_t, wv_t = w_in[:D], w_in[D:2 * D], w_in[2 * D:]
    bq_t, bk_t, bv_t = b_in[:D], b_in[D:2 * D], b_in[2 * D:]

    wq_s = jnp.zeros((H, Dp, hd), bf)
    wk_s = jnp.zeros((H, Dp, hd), bf)
    wvo_s = jnp.zeros((H, Dp, Dp), bf)
    bq_s = jnp.zeros((H, 1, hd), jnp.float32)
    bk_s = jnp.zeros((H, 1, hd), jnp.float32)
    for h in range(H):
        sl = slice(h * hd, (h + 1) * hd)
        wq_s = wq_s.at[h, :D, :].set(wq_t[sl].T.astype(bf))
        wk_s = wk_s.at[h, :D, :].set(wk_t[sl].T.astype(bf))
        # (p_h @ v_h) @ Wo_h == p_h @ (x @ (Wv_h^T @ Wo^T[sl]))  (associativity)
        wvo_s = wvo_s.at[h, :D, :D].set((wv_t[sl].T @ wo.T[sl]).astype(bf))
        bq_s = bq_s.at[h, 0, :].set(bq_t[sl])
        bk_s = bk_s.at[h, 0, :].set(bk_t[sl])
    # softmax rows sum to 1 => value bias folds into a constant output bias
    b_attn = _pad2((bo + bv_t @ wo.T).reshape(1, -1), 1, Dp).astype(jnp.float32)

    kernel_args = (x_p, src_p, dst_p, ea_p,
                   we_p, be_p, w1_p, b1_p, w2_p, b2_p,
                   *ln1l,
                   wq_s, bq_s, wk_s, bk_s, wvo_s, b_attn,
                   *ln1a,
                   wf1_p, bf1_p, wf2_p, bf2_p,
                   *ln2)
    dims = dict(Np=Np, Dp=Dp, Ep=Ep, Fp=Fp, H=H, hd=hd, De=De)
    return kernel_args, dims


def estimator_layer(x, edge_index, edge_attr, params, num_heads):
    N, D = x.shape
    args, dm = pack_inputs(x, edge_index, edge_attr, params, num_heads)
    Np, Dp, Ep, Fp, H = dm["Np"], dm["Dp"], dm["Ep"], dm["Fp"], dm["H"]

    kernel = partial(estimator_layer_kernel, N, D, num_heads)

    # VMEM budget sized from the actual buffers (+ live-intermediate estimate)
    io_bytes = int(sum(int(a.size) * a.dtype.itemsize for a in args) + Np * Dp * 4)
    inter_bytes = (2 * Ep * Np * 2          # in-register one-hots (bf16)
                   + 2 * Ep * Dp * 4        # edge messages
                   + 3 * Np * Np * 4        # one head's scores / softmax
                   + 16 * Np * Dp * 4       # activations / residuals
                   + 2 * Np * Fp * 4)       # FF hidden
    vmem_limit = int(min(48 * 2**20, max(16 * 2**20, 2 * (io_bytes + inter_bytes))))

    flops = 2 * (2 * Ep * Np * Dp + Ep * dm["De"] * Dp + 2 * Np * Dp * Dp
                 + H * (2 * Np * Dp * dm["hd"] + Np * Np * dm["hd"]
                        + Np * Dp * Dp + Np * Np * Dp)
                 + 2 * Np * Dp * Fp)
    cost = pl.CostEstimate(flops=flops, transcendentals=H * Np * Np,
                           bytes_accessed=io_bytes)

    vmem = pltpu.MemorySpace.VMEM
    out = pl.pallas_call(
        kernel,
        out_shape=jax.ShapeDtypeStruct((Np, Dp), jnp.float32),
        in_specs=[pl.BlockSpec(memory_space=vmem) for _ in args],
        out_specs=pl.BlockSpec(memory_space=vmem),
        compiler_params=pltpu.CompilerParams(vmem_limit_bytes=vmem_limit),
        cost_estimate=cost,
    )(*args)
    return out[:N, :D]


def init_params(key, dim_h, dim_edge):
    D, De = dim_h, dim_edge
    ks = jax.random.split(key, 14)

    def lin_w(k, out_f, in_f):
        return jax.random.normal(k, (out_f, in_f), jnp.float32) / math.sqrt(in_f)

    def lin_b(k, out_f):
        return jax.random.normal(k, (out_f,), jnp.float32) * 0.02

    we, be = lin_w(ks[0], D, De), lin_b(ks[1], D)              # GINE edge Linear
    w1, b1 = lin_w(ks[2], D, D), lin_b(ks[3], D)               # GINE MLP linear 1
    w2, b2 = lin_w(ks[4], D, D), lin_b(ks[5], D)               # GINE MLP linear 2
    ln1l_w, ln1l_b = jnp.ones((D,), jnp.float32), jnp.zeros((D,), jnp.float32)
    w_in, b_in = lin_w(ks[6], 3 * D, D), lin_b(ks[7], 3 * D)   # MHA in_proj
    wo, bo = lin_w(ks[8], D, D), lin_b(ks[9], D)               # MHA out_proj
    ln1a_w, ln1a_b = jnp.ones((D,), jnp.float32), jnp.zeros((D,), jnp.float32)
    wf1, bf1 = lin_w(ks[10], 2 * D, D), lin_b(ks[11], 2 * D)   # ff_linear1
    wf2, bf2 = lin_w(ks[12], D, 2 * D), lin_b(ks[13], D)       # ff_linear2
    ln2_w, ln2_b = jnp.ones((D,), jnp.float32), jnp.zeros((D,), jnp.float32)

    return (we, be, w1, b1, w2, b2, ln1l_w, ln1l_b,
            w_in, b_in, wo, bo, ln1a_w, ln1a_b,
            wf1, bf1, wf2, bf2, ln2_w, ln2_b)


if __name__ == "__main__":
    # Small synthetic single graph (batch vector all zeros => mask.all() holds)
    N = 16          # nodes
    E = 32          # edges
    dim_h = 32
    dim_edge = 8
    num_heads = 4

    key = jax.random.PRNGKey(0)
    kx, ke, ks, kd, kp = jax.random.split(key, 5)

    x = jax.random.normal(kx, (N, dim_h), jnp.float32)
    edge_attr = jax.random.normal(ke, (E, dim_edge), jnp.float32)
    src = jax.random.randint(ks, (E,), 0, N)    # edge_index[0] (source j)
    dst = jax.random.randint(kd, (E,), 0, N)    # edge_index[1] (target i)
    edge_index = jnp.stack([src, dst], axis=0)

    params = init_params(kp, dim_h, dim_edge)

    out = estimator_layer(x, edge_index, edge_attr, params, num_heads)
    out = jax.block_until_ready(out)
    assert out.shape == (N, dim_h) and bool(jnp.all(jnp.isfinite(out)))
    print("KERNEL_OK")
</pallas_src>

<mosaic_0001>
module attributes {stable_mosaic.version = 11 : i64} {
  func.func @estimator_layer_kernel(%arg0: memref<16x128xf32, #tpu.memory_space<vmem>>, %arg1: memref<128x1xi32, #tpu.memory_space<vmem>>, %arg2: memref<1x128xi32, #tpu.memory_space<vmem>>, %arg3: memref<128x8xbf16, #tpu.memory_space<vmem>>, %arg4: memref<8x128xbf16, #tpu.memory_space<vmem>>, %arg5: memref<1x128xf32, #tpu.memory_space<vmem>>, %arg6: memref<128x128xbf16, #tpu.memory_space<vmem>>, %arg7: memref<1x128xf32, #tpu.memory_space<vmem>>, %arg8: memref<128x128xbf16, #tpu.memory_space<vmem>>, %arg9: memref<1x128xf32, #tpu.memory_space<vmem>>, %arg10: memref<1x128xf32, #tpu.memory_space<vmem>>, %arg11: memref<1x128xf32, #tpu.memory_space<vmem>>, %arg12: memref<4x128x8xbf16, #tpu.memory_space<vmem>>, %arg13: memref<4x1x8xf32, #tpu.memory_space<vmem>>, %arg14: memref<4x128x8xbf16, #tpu.memory_space<vmem>>, %arg15: memref<4x1x8xf32, #tpu.memory_space<vmem>>, %arg16: memref<4x128x128xbf16, #tpu.memory_space<vmem>>, %arg17: memref<1x128xf32, #tpu.memory_space<vmem>>, %arg18: memref<1x128xf32, #tpu.memory_space<vmem>>, %arg19: memref<1x128xf32, #tpu.memory_space<vmem>>, %arg20: memref<128x128xbf16, #tpu.memory_space<vmem>>, %arg21: memref<1x128xf32, #tpu.memory_space<vmem>>, %arg22: memref<128x128xbf16, #tpu.memory_space<vmem>>, %arg23: memref<1x128xf32, #tpu.memory_space<vmem>>, %arg24: memref<1x128xf32, #tpu.memory_space<vmem>>, %arg25: memref<1x128xf32, #tpu.memory_space<vmem>>, %arg26: memref<16x128xf32, #tpu.memory_space<vmem>>) attributes {dimension_semantics = [], scalar_prefetch = 0 : i64, scratch_operands = 0 : i64, tpu.core_type = #tpu.core_type<tc>} {
    %c0 = arith.constant 0 : index
    %c0_0 = arith.constant 0 : index
    %0 = vector.load %arg0[%c0, %c0_0] : memref<16x128xf32, #tpu.memory_space<vmem>>, vector<16x128xf32>
    %1 = arith.truncf %0 : vector<16x128xf32> to vector<16x128xbf16>
    %2 = tpu.iota {dimensions = array<i32: 0>} : vector<16x128xi32>
    %c16_i32 = arith.constant 16 : i32
    %3 = vector.broadcast %c16_i32 : i32 to vector<16x128xi32>
    %4 = arith.cmpi slt, %2, %3 : vector<16x128xi32>
    %5 = tpu.iota {dimensions = array<i32: 1>} : vector<16x128xi32>
    %c32_i32 = arith.constant 32 : i32
    %6 = vector.broadcast %c32_i32 : i32 to vector<16x128xi32>
    %7 = arith.cmpi slt, %5, %6 : vector<16x128xi32>
    %8 = arith.andi %4, %7 : vector<16x128xi1>
    %cst = arith.constant 1.000000e+00 : f32
    %cst_1 = arith.constant 0.000000e+00 : f32
    %9 = vector.broadcast %cst : f32 to vector<16x128xf32>
    %10 = vector.broadcast %cst_1 : f32 to vector<16x128xf32>
    %11 = arith.select %8, %9, %10 : vector<16x128xi1>, vector<16x128xf32>
    %c0_2 = arith.constant 0 : index
    %c0_3 = arith.constant 0 : index
    %12 = vector.load %arg1[%c0_2, %c0_3] : memref<128x1xi32, #tpu.memory_space<vmem>>, vector<128x1xi32>
    %13 = tpu.iota {dimensions = array<i32: 1>} : vector<128x16xi32>
    %14 = vector.broadcast %12 : vector<128x1xi32> to vector<128x16xi32>
    %15 = arith.cmpi eq, %14, %13 : vector<128x16xi32>
    %cst_4 = arith.constant 1.000000e+00 : f32
    %cst_5 = arith.constant 0.000000e+00 : f32
    %16 = vector.broadcast %cst_4 : f32 to vector<128x16xf32>
    %17 = vector.broadcast %cst_5 : f32 to vector<128x16xf32>
    %18 = arith.select %15, %16, %17 : vector<128x16xi1>, vector<128x16xf32>
    %19 = arith.truncf %18 : vector<128x16xf32> to vector<128x16xbf16>
    %20 = tpu.iota {dimensions = array<i32: 0>} : vector<16x128xi32>
    %c0_6 = arith.constant 0 : index
    %c0_7 = arith.constant 0 : index
    %21 = vector.load %arg2[%c0_6, %c0_7] : memref<1x128xi32, #tpu.memory_space<vmem>>, vector<1x128xi32>
    %22 = vector.broadcast %21 : vector<1x128xi32> to vector<16x128xi32>
    %23 = arith.cmpi eq, %20, %22 : vector<16x128xi32>
    %cst_8 = arith.constant 1.000000e+00 : f32
    %cst_9 = arith.constant 0.000000e+00 : f32
    %24 = vector.broadcast %cst_8 : f32 to vector<16x128xf32>
    %25 = vector.broadcast %cst_9 : f32 to vector<16x128xf32>
    %26 = arith.select %23, %24, %25 : vector<16x128xi1>, vector<16x128xf32>
    %27 = arith.truncf %26 : vector<16x128xf32> to vector<16x128xbf16>
    %cst_10 = arith.constant dense<0.000000e+00> : vector<128x128xf32>
    %28 = tpu.matmul %19, %1, %cst_10 {dimension_numbers = #tpu.dot_dimension_numbers<[1], [0], [0], [1], [0, 0, 1, 1], [], []>} : vector<128x16xbf16>, vector<16x128xbf16>, vector<128x128xf32> -> vector<128x128xf32>
    %c0_11 = arith.constant 0 : index
    %c0_12 = arith.constant 0 : index
    %29 = vector.load %arg3[%c0_11, %c0_12] : memref<128x8xbf16, #tpu.memory_space<vmem>>, vector<128x8xbf16>
    %c0_13 = arith.constant 0 : index
    %c0_14 = arith.constant 0 : index
    %30 = vector.load %arg4[%c0_13, %c0_14] : memref<8x128xbf16, #tpu.memory_space<vmem>>, vector<8x128xbf16>
    %cst_15 = arith.constant dense<0.000000e+00> : vector<128x128xf32>
    %31 = tpu.matmul %29, %30, %cst_15 {dimension_numbers = #tpu.dot_dimension_numbers<[1], [0], [0], [1], [0, 0, 1, 1], [], []>} : vector<128x8xbf16>, vector<8x128xbf16>, vector<128x128xf32> -> vector<128x128xf32>
    %c0_16 = arith.constant 0 : index
    %c0_17 = arith.constant 0 : index
    %32 = vector.load %arg5[%c0_16, %c0_17] : memref<1x128xf32, #tpu.memory_space<vmem>>, vector<1x128xf32>
    %33 = vector.broadcast %32 : vector<1x128xf32> to vector<128x128xf32>
    %34 = arith.addf %31, %33 : vector<128x128xf32>
    %35 = arith.addf %28, %34 : vector<128x128xf32>
    %cst_18 = arith.constant 0.000000e+00 : f32
    %36 = vector.broadcast %cst_18 : f32 to vector<128x128xf32>
    %37 = arith.maximumf %35, %36 : vector<128x128xf32>
    %38 = arith.truncf %37 : vector<128x128xf32> to vector<128x128xbf16>
    %cst_19 = arith.constant dense<0.000000e+00> : vector<16x128xf32>
    %39 = tpu.matmul %27, %38, %cst_19 {dimension_numbers = #tpu.dot_dimension_numbers<[1], [0], [0], [1], [0, 0, 1, 1], [], []>} : vector<16x128xbf16>, vector<128x128xbf16>, vector<16x128xf32> -> vector<16x128xf32>
    %40 = arith.addf %0, %39 : vector<16x128xf32>
    %c0_20 = arith.constant 0 : index
    %c0_21 = arith.constant 0 : index
    %41 = vector.load %arg6[%c0_20, %c0_21] : memref<128x128xbf16, #tpu.memory_space<vmem>>, vector<128x128xbf16>
    %42 = arith.truncf %40 : vector<16x128xf32> to vector<16x128xbf16>
    %cst_22 = arith.constant dense<0.000000e+00> : vector<16x128xf32>
    %43 = tpu.matmul %42, %41, %cst_22 {dimension_numbers = #tpu.dot_dimension_numbers<[1], [0], [0], [1], [0, 0, 1, 1], [], []>} : vector<16x128xbf16>, vector<128x128xbf16>, vector<16x128xf32> -> vector<16x128xf32>
    %c0_23 = arith.constant 0 : index
    %c0_24 = arith.constant 0 : index
    %44 = vector.load %arg7[%c0_23, %c0_24] : memref<1x128xf32, #tpu.memory_space<vmem>>, vector<1x128xf32>
    %45 = vector.broadcast %44 : vector<1x128xf32> to vector<16x128xf32>
    %46 = arith.addf %43, %45 : vector<16x128xf32>
    %cst_25 = arith.constant 0.000000e+00 : f32
    %47 = vector.broadcast %cst_25 : f32 to vector<16x128xf32>
    %48 = arith.maximumf %46, %47 : vector<16x128xf32>
    %c0_26 = arith.constant 0 : index
    %c0_27 = arith.constant 0 : index
    %49 = vector.load %arg8[%c0_26, %c0_27] : memref<128x128xbf16, #tpu.memory_space<vmem>>, vector<128x128xbf16>
    %50 = arith.truncf %48 : vector<16x128xf32> to vector<16x128xbf16>
    %cst_28 = arith.constant dense<0.000000e+00> : vector<16x128xf32>
    %51 = tpu.matmul %50, %49, %cst_28 {dimension_numbers = #tpu.dot_dimension_numbers<[1], [0], [0], [1], [0, 0, 1, 1], [], []>} : vector<16x128xbf16>, vector<128x128xbf16>, vector<16x128xf32> -> vector<16x128xf32>
    %c0_29 = arith.constant 0 : index
    %c0_30 = arith.constant 0 : index
    %52 = vector.load %arg9[%c0_29, %c0_30] : memref<1x128xf32, #tpu.memory_space<vmem>>, vector<1x128xf32>
    %53 = vector.broadcast %52 : vector<1x128xf32> to vector<16x128xf32>
    %54 = arith.addf %51, %53 : vector<16x128xf32>
    %55 = arith.addf %0, %54 : vector<16x128xf32>
    %c0_31 = arith.constant 0 : index
    %c0_32 = arith.constant 0 : index
    %56 = vector.load %arg10[%c0_31, %c0_32] : memref<1x128xf32, #tpu.memory_space<vmem>>, vector<1x128xf32>
    %c0_33 = arith.constant 0 : index
    %c0_34 = arith.constant 0 : index
    %57 = vector.load %arg11[%c0_33, %c0_34] : memref<1x128xf32, #tpu.memory_space<vmem>>, vector<1x128xf32>
    %58 = arith.mulf %55, %11 : vector<16x128xf32>
    %59 = vector.shape_cast %58 : vector<16x128xf32> to vector<1x16x128xf32>
    %cst_35 = arith.constant dense<0.000000e+00> : vector<1xf32>
    %60 = vector.multi_reduction <add>, %59, %cst_35 [1, 2] : vector<1x16x128xf32> to vector<1xf32>
    %61 = vector.shape_cast %60 : vector<1xf32> to vector<1x1x1xf32>
    %62 = vector.extract %61[0, 0, 0] : f32 from vector<1x1x1xf32>
    %cst_36 = arith.constant 0.001953125 : f32
    %63 = arith.mulf %62, %cst_36 : f32
    %64 = vector.broadcast %63 : f32 to vector<16x128xf32>
    %65 = arith.subf %55, %64 : vector<16x128xf32>
    %66 = arith.mulf %65, %11 : vector<16x128xf32>
    %67 = arith.mulf %66, %66 : vector<16x128xf32>
    %68 = vector.shape_cast %67 : vector<16x128xf32> to vector<1x16x128xf32>
    %cst_37 = arith.constant dense<0.000000e+00> : vector<1xf32>
    %69 = vector.multi_reduction <add>, %68, %cst_37 [1, 2] : vector<1x16x128xf32> to vector<1xf32>
    %70 = vector.shape_cast %69 : vector<1xf32> to vector<1x1x1xf32>
    %71 = vector.extract %70[0, 0, 0] : f32 from vector<1x1x1xf32>
    %cst_38 = arith.constant 0.001953125 : f32
    %72 = arith.mulf %71, %cst_38 : f32
    %73 = vector.broadcast %63 : f32 to vector<16x128xf32>
    %74 = arith.subf %55, %73 : vector<16x128xf32>
    %cst_39 = arith.constant 9.99999974E-6 : f32
    %75 = arith.addf %72, %cst_39 : f32
    %76 = math.rsqrt %75 : f32
    %77 = vector.broadcast %76 : f32 to vector<16x128xf32>
    %78 = arith.mulf %74, %77 : vector<16x128xf32>
    %79 = vector.broadcast %56 : vector<1x128xf32> to vector<16x128xf32>
    %80 = arith.mulf %78, %79 : vector<16x128xf32>
    %81 = vector.broadcast %57 : vector<1x128xf32> to vector<16x128xf32>
    %82 = arith.addf %80, %81 : vector<16x128xf32>
    %83 = tpu.iota {dimensions = array<i32: 1>} : vector<16x16xi32>
    %c16_i32_40 = arith.constant 16 : i32
    %84 = vector.broadcast %c16_i32_40 : i32 to vector<16x16xi32>
    %85 = arith.cmpi slt, %83, %84 : vector<16x16xi32>
    %cst_41 = arith.constant 0.000000e+00 : f32
    %86 = vector.broadcast %cst_41 : f32 to vector<16x128xf32>
    %c0_42 = arith.constant 0 : index
    %c0_43 = arith.constant 0 : index
    %c0_44 = arith.constant 0 : index
    %87 = vector.load %arg12[%c0_42, %c0_43, %c0_44] : memref<4x128x8xbf16, #tpu.memory_space<vmem>>, vector<1x128x8xbf16>
    %88 = vector.shape_cast %87 : vector<1x128x8xbf16> to vector<128x8xbf16>
    %cst_45 = arith.constant dense<0.000000e+00> : vector<16x8xf32>
    %89 = tpu.matmul %1, %88, %cst_45 {dimension_numbers = #tpu.dot_dimension_numbers<[1], [0], [0], [1], [0, 0, 1, 1], [], []>} : vector<16x128xbf16>, vector<128x8xbf16>, vector<16x8xf32> -> vector<16x8xf32>
    %c0_46 = arith.constant 0 : index
    %c0_47 = arith.constant 0 : index
    %c0_48 = arith.constant 0 : index
    %90 = vector.load %arg13[%c0_46, %c0_47, %c0_48] : memref<4x1x8xf32, #tpu.memory_space<vmem>>, vector<1x1x8xf32>
    %91 = vector.shape_cast %90 : vector<1x1x8xf32> to vector<1x8xf32>
    %92 = vector.broadcast %91 : vector<1x8xf32> to vector<16x8xf32>
    %93 = arith.addf %89, %92 : vector<16x8xf32>
    %cst_49 = arith.constant 0.353553385 : f32
    %94 = vector.broadcast %cst_49 : f32 to vector<16x8xf32>
    %95 = arith.mulf %93, %94 : vector<16x8xf32>
    %c0_50 = arith.constant 0 : index
    %c0_51 = arith.constant 0 : index
    %c0_52 = arith.constant 0 : index
    %96 = vector.load %arg14[%c0_50, %c0_51, %c0_52] : memref<4x128x8xbf16, #tpu.memory_space<vmem>>, vector<1x128x8xbf16>
    %97 = vector.shape_cast %96 : vector<1x128x8xbf16> to vector<128x8xbf16>
    %cst_53 = arith.constant dense<0.000000e+00> : vector<16x8xf32>
    %98 = tpu.matmul %1, %97, %cst_53 {dimension_numbers = #tpu.dot_dimension_numbers<[1], [0], [0], [1], [0, 0, 1, 1], [], []>} : vector<16x128xbf16>, vector<128x8xbf16>, vector<16x8xf32> -> vector<16x8xf32>
    %c0_54 = arith.constant 0 : index
    %c0_55 = arith.constant 0 : index
    %c0_56 = arith.constant 0 : index
    %99 = vector.load %arg15[%c0_54, %c0_55, %c0_56] : memref<4x1x8xf32, #tpu.memory_space<vmem>>, vector<1x1x8xf32>
    %100 = vector.shape_cast %99 : vector<1x1x8xf32> to vector<1x8xf32>
    %101 = vector.broadcast %100 : vector<1x8xf32> to vector<16x8xf32>
    %102 = arith.addf %98, %101 : vector<16x8xf32>
    %103 = arith.truncf %95 : vector<16x8xf32> to vector<16x8xbf16>
    %104 = arith.truncf %102 : vector<16x8xf32> to vector<16x8xbf16>
    %cst_57 = arith.constant dense<0.000000e+00> : vector<16x16xf32>
    %105 = tpu.matmul %103, %104, %cst_57 {dimension_numbers = #tpu.dot_dimension_numbers<[1], [1], [0], [0], [0, 0, 1, 0], [], []>} : vector<16x8xbf16>, vector<16x8xbf16>, vector<16x16xf32> -> vector<16x16xf32>
    %cst_58 = arith.constant -1.000000e+30 : f32
    %106 = vector.broadcast %cst_58 : f32 to vector<16x16xf32>
    %107 = arith.select %85, %105, %106 : vector<16x16xi1>, vector<16x16xf32>
    %cst_59 = arith.constant dense<0xFF800000> : vector<16xf32>
    %108 = vector.multi_reduction <maximumf>, %107, %cst_59 [1] : vector<16x16xf32> to vector<16xf32>
    %109 = vector.shape_cast %108 : vector<16xf32> to vector<16x1xf32>
    %110 = vector.broadcast %109 : vector<16x1xf32> to vector<16x16xf32>
    %111 = arith.subf %107, %110 : vector<16x16xf32>
    %112 = math.exp %111 : vector<16x16xf32>
    %cst_60 = arith.constant dense<0.000000e+00> : vector<16xf32>
    %113 = vector.multi_reduction <add>, %112, %cst_60 [1] : vector<16x16xf32> to vector<16xf32>
    %114 = vector.shape_cast %113 : vector<16xf32> to vector<16x1xf32>
    %115 = vector.broadcast %114 : vector<16x1xf32> to vector<16x16xf32>
    %116 = arith.divf %112, %115 : vector<16x16xf32>
    %c0_61 = arith.constant 0 : index
    %c0_62 = arith.constant 0 : index
    %c0_63 = arith.constant 0 : index
    %117 = vector.load %arg16[%c0_61, %c0_62, %c0_63] : memref<4x128x128xbf16, #tpu.memory_space<vmem>>, vector<1x128x128xbf16>
    %118 = vector.shape_cast %117 : vector<1x128x128xbf16> to vector<128x128xbf16>
    %cst_64 = arith.constant dense<0.000000e+00> : vector<16x128xf32>
    %119 = tpu.matmul %1, %118, %cst_64 {dimension_numbers = #tpu.dot_dimension_numbers<[1], [0], [0], [1], [0, 0, 1, 1], [], []>} : vector<16x128xbf16>, vector<128x128xbf16>, vector<16x128xf32> -> vector<16x128xf32>
    %120 = arith.truncf %116 : vector<16x16xf32> to vector<16x16xbf16>
    %121 = arith.truncf %119 : vector<16x128xf32> to vector<16x128xbf16>
    %cst_65 = arith.constant dense<0.000000e+00> : vector<16x128xf32>
    %122 = tpu.matmul %120, %121, %cst_65 {dimension_numbers = #tpu.dot_dimension_numbers<[1], [0], [0], [1], [0, 0, 1, 1], [], []>} : vector<16x16xbf16>, vector<16x128xbf16>, vector<16x128xf32> -> vector<16x128xf32>
    %123 = arith.addf %86, %122 : vector<16x128xf32>
    %c1 = arith.constant 1 : index
    %c0_66 = arith.constant 0 : index
    %c0_67 = arith.constant 0 : index
    %124 = vector.load %arg12[%c1, %c0_66, %c0_67] : memref<4x128x8xbf16, #tpu.memory_space<vmem>>, vector<1x128x8xbf16>
    %125 = vector.shape_cast %124 : vector<1x128x8xbf16> to vector<128x8xbf16>
    %cst_68 = arith.constant dense<0.000000e+00> : vector<16x8xf32>
    %126 = tpu.matmul %1, %125, %cst_68 {dimension_numbers = #tpu.dot_dimension_numbers<[1], [0], [0], [1], [0, 0, 1, 1], [], []>} : vector<16x128xbf16>, vector<128x8xbf16>, vector<16x8xf32> -> vector<16x8xf32>
    %c1_69 = arith.constant 1 : index
    %c0_70 = arith.constant 0 : index
    %c0_71 = arith.constant 0 : index
    %127 = vector.load %arg13[%c1_69, %c0_70, %c0_71] : memref<4x1x8xf32, #tpu.memory_space<vmem>>, vector<1x1x8xf32>
    %128 = vector.shape_cast %127 : vector<1x1x8xf32> to vector<1x8xf32>
    %129 = vector.broadcast %128 : vector<1x8xf32> to vector<16x8xf32>
    %130 = arith.addf %126, %129 : vector<16x8xf32>
    %cst_72 = arith.constant 0.353553385 : f32
    %131 = vector.broadcast %cst_72 : f32 to vector<16x8xf32>
    %132 = arith.mulf %130, %131 : vector<16x8xf32>
    %c1_73 = arith.constant 1 : index
    %c0_74 = arith.constant 0 : index
    %c0_75 = arith.constant 0 : index
    %133 = vector.load %arg14[%c1_73, %c0_74, %c0_75] : memref<4x128x8xbf16, #tpu.memory_space<vmem>>, vector<1x128x8xbf16>
    %134 = vector.shape_cast %133 : vector<1x128x8xbf16> to vector<128x8xbf16>
    %cst_76 = arith.constant dense<0.000000e+00> : vector<16x8xf32>
    %135 = tpu.matmul %1, %134, %cst_76 {dimension_numbers = #tpu.dot_dimension_numbers<[1], [0], [0], [1], [0, 0, 1, 1], [], []>} : vector<16x128xbf16>, vector<128x8xbf16>, vector<16x8xf32> -> vector<16x8xf32>
    %c1_77 = arith.constant 1 : index
    %c0_78 = arith.constant 0 : index
    %c0_79 = arith.constant 0 : index
    %136 = vector.load %arg15[%c1_77, %c0_78, %c0_79] : memref<4x1x8xf32, #tpu.memory_space<vmem>>, vector<1x1x8xf32>
    %137 = vector.shape_cast %136 : vector<1x1x8xf32> to vector<1x8xf32>
    %138 = vector.broadcast %137 : vector<1x8xf32> to vector<16x8xf32>
    %139 = arith.addf %135, %138 : vector<16x8xf32>
    %140 = arith.truncf %132 : vector<16x8xf32> to vector<16x8xbf16>
    %141 = arith.truncf %139 : vector<16x8xf32> to vector<16x8xbf16>
    %cst_80 = arith.constant dense<0.000000e+00> : vector<16x16xf32>
    %142 = tpu.matmul %140, %141, %cst_80 {dimension_numbers = #tpu.dot_dimension_numbers<[1], [1], [0], [0], [0, 0, 1, 0], [], []>} : vector<16x8xbf16>, vector<16x8xbf16>, vector<16x16xf32> -> vector<16x16xf32>
    %cst_81 = arith.constant -1.000000e+30 : f32
    %143 = vector.broadcast %cst_81 : f32 to vector<16x16xf32>
    %144 = arith.select %85, %142, %143 : vector<16x16xi1>, vector<16x16xf32>
    %cst_82 = arith.constant dense<0xFF800000> : vector<16xf32>
    %145 = vector.multi_reduction <maximumf>, %144, %cst_82 [1] : vector<16x16xf32> to vector<16xf32>
    %146 = vector.shape_cast %145 : vector<16xf32> to vector<16x1xf32>
    %147 = vector.broadcast %146 : vector<16x1xf32> to vector<16x16xf32>
    %148 = arith.subf %144, %147 : vector<16x16xf32>
    %149 = math.exp %148 : vector<16x16xf32>
    %cst_83 = arith.constant dense<0.000000e+00> : vector<16xf32>
    %150 = vector.multi_reduction <add>, %149, %cst_83 [1] : vector<16x16xf32> to vector<16xf32>
    %151 = vector.shape_cast %150 : vector<16xf32> to vector<16x1xf32>
    %152 = vector.broadcast %151 : vector<16x1xf32> to vector<16x16xf32>
    %153 = arith.divf %149, %152 : vector<16x16xf32>
    %c1_84 = arith.constant 1 : index
    %c0_85 = arith.constant 0 : index
    %c0_86 = arith.constant 0 : index
    %154 = vector.load %arg16[%c1_84, %c0_85, %c0_86] : memref<4x128x128xbf16, #tpu.memory_space<vmem>>, vector<1x128x128xbf16>
    %155 = vector.shape_cast %154 : vector<1x128x128xbf16> to vector<128x128xbf16>
    %cst_87 = arith.constant dense<0.000000e+00> : vector<16x128xf32>
    %156 = tpu.matmul %1, %155, %cst_87 {dimension_numbers = #tpu.dot_dimension_numbers<[1], [0], [0], [1], [0, 0, 1, 1], [], []>} : vector<16x128xbf16>, vector<128x128xbf16>, vector<16x128xf32> -> vector<16x128xf32>
    %157 = arith.truncf %153 : vector<16x16xf32> to vector<16x16xbf16>
    %158 = arith.truncf %156 : vector<16x128xf32> to vector<16x128xbf16>
    %cst_88 = arith.constant dense<0.000000e+00> : vector<16x128xf32>
    %159 = tpu.matmul %157, %158, %cst_88 {dimension_numbers = #tpu.dot_dimension_numbers<[1], [0], [0], [1], [0, 0, 1, 1], [], []>} : vector<16x16xbf16>, vector<16x128xbf16>, vector<16x128xf32> -> vector<16x128xf32>
    %160 = arith.addf %123, %159 : vector<16x128xf32>
    %c2 = arith.constant 2 : index
    %c0_89 = arith.constant 0 : index
    %c0_90 = arith.constant 0 : index
    %161 = vector.load %arg12[%c2, %c0_89, %c0_90] : memref<4x128x8xbf16, #tpu.memory_space<vmem>>, vector<1x128x8xbf16>
    %162 = vector.shape_cast %161 : vector<1x128x8xbf16> to vector<128x8xbf16>
    %cst_91 = arith.constant dense<0.000000e+00> : vector<16x8xf32>
    %163 = tpu.matmul %1, %162, %cst_91 {dimension_numbers = #tpu.dot_dimension_numbers<[1], [0], [0], [1], [0, 0, 1, 1], [], []>} : vector<16x128xbf16>, vector<128x8xbf16>, vector<16x8xf32> -> vector<16x8xf32>
    %c2_92 = arith.constant 2 : index
    %c0_93 = arith.constant 0 : index
    %c0_94 = arith.constant 0 : index
    %164 = vector.load %arg13[%c2_92, %c0_93, %c0_94] : memref<4x1x8xf32, #tpu.memory_space<vmem>>, vector<1x1x8xf32>
    %165 = vector.shape_cast %164 : vector<1x1x8xf32> to vector<1x8xf32>
    %166 = vector.broadcast %165 : vector<1x8xf32> to vector<16x8xf32>
    %167 = arith.addf %163, %166 : vector<16x8xf32>
    %cst_95 = arith.constant 0.353553385 : f32
    %168 = vector.broadcast %cst_95 : f32 to vector<16x8xf32>
    %169 = arith.mulf %167, %168 : vector<16x8xf32>
    %c2_96 = arith.constant 2 : index
    %c0_97 = arith.constant 0 : index
    %c0_98 = arith.constant 0 : index
    %170 = vector.load %arg14[%c2_96, %c0_97, %c0_98] : memref<4x128x8xbf16, #tpu.memory_space<vmem>>, vector<1x128x8xbf16>
    %171 = vector.shape_cast %170 : vector<1x128x8xbf16> to vector<128x8xbf16>
    %cst_99 = arith.constant dense<0.000000e+00> : vector<16x8xf32>
    %172 = tpu.matmul %1, %171, %cst_99 {dimension_numbers = #tpu.dot_dimension_numbers<[1], [0], [0], [1], [0, 0, 1, 1], [], []>} : vector<16x128xbf16>, vector<128x8xbf16>, vector<16x8xf32> -> vector<16x8xf32>
    %c2_100 = arith.constant 2 : index
    %c0_101 = arith.constant 0 : index
    %c0_102 = arith.constant 0 : index
    %173 = vector.load %arg15[%c2_100, %c0_101, %c0_102] : memref<4x1x8xf32, #tpu.memory_space<vmem>>, vector<1x1x8xf32>
    %174 = vector.shape_cast %173 : vector<1x1x8xf32> to vector<1x8xf32>
    %175 = vector.broadcast %174 : vector<1x8xf32> to vector<16x8xf32>
    %176 = arith.addf %172, %175 : vector<16x8xf32>
    %177 = arith.truncf %169 : vector<16x8xf32> to vector<16x8xbf16>
    %178 = arith.truncf %176 : vector<16x8xf32> to vector<16x8xbf16>
    %cst_103 = arith.constant dense<0.000000e+00> : vector<16x16xf32>
    %179 = tpu.matmul %177, %178, %cst_103 {dimension_numbers = #tpu.dot_dimension_numbers<[1], [1], [0], [0], [0, 0, 1, 0], [], []>} : vector<16x8xbf16>, vector<16x8xbf16>, vector<16x16xf32> -> vector<16x16xf32>
    %cst_104 = arith.constant -1.000000e+30 : f32
    %180 = vector.broadcast %cst_104 : f32 to vector<16x16xf32>
    %181 = arith.select %85, %179, %180 : vector<16x16xi1>, vector<16x16xf32>
    %cst_105 = arith.constant dense<0xFF800000> : vector<16xf32>
    %182 = vector.multi_reduction <maximumf>, %181, %cst_105 [1] : vector<16x16xf32> to vector<16xf32>
    %183 = vector.shape_cast %182 : vector<16xf32> to vector<16x1xf32>
    %184 = vector.broadcast %183 : vector<16x1xf32> to vector<16x16xf32>
    %185 = arith.subf %181, %184 : vector<16x16xf32>
    %186 = math.exp %185 : vector<16x16xf32>
    %cst_106 = arith.constant dense<0.000000e+00> : vector<16xf32>
    %187 = vector.multi_reduction <add>, %186, %cst_106 [1] : vector<16x16xf32> to vector<16xf32>
    %188 = vector.shape_cast %187 : vector<16xf32> to vector<16x1xf32>
    %189 = vector.broadcast %188 : vector<16x1xf32> to vector<16x16xf32>
    %190 = arith.divf %186, %189 : vector<16x16xf32>
    %c2_107 = arith.constant 2 : index
    %c0_108 = arith.constant 0 : index
    %c0_109 = arith.constant 0 : index
    %191 = vector.load %arg16[%c2_107, %c0_108, %c0_109] : memref<4x128x128xbf16, #tpu.memory_space<vmem>>, vector<1x128x128xbf16>
    %192 = vector.shape_cast %191 : vector<1x128x128xbf16> to vector<128x128xbf16>
    %cst_110 = arith.constant dense<0.000000e+00> : vector<16x128xf32>
    %193 = tpu.matmul %1, %192, %cst_110 {dimension_numbers = #tpu.dot_dimension_numbers<[1], [0], [0], [1], [0, 0, 1, 1], [], []>} : vector<16x128xbf16>, vector<128x128xbf16>, vector<16x128xf32> -> vector<16x128xf32>
    %194 = arith.truncf %190 : vector<16x16xf32> to vector<16x16xbf16>
    %195 = arith.truncf %193 : vector<16x128xf32> to vector<16x128xbf16>
    %cst_111 = arith.constant dense<0.000000e+00> : vector<16x128xf32>
    %196 = tpu.matmul %194, %195, %cst_111 {dimension_numbers = #tpu.dot_dimension_numbers<[1], [0], [0], [1], [0, 0, 1, 1], [], []>} : vector<16x16xbf16>, vector<16x128xbf16>, vector<16x128xf32> -> vector<16x128xf32>
    %197 = arith.addf %160, %196 : vector<16x128xf32>
    %c3 = arith.constant 3 : index
    %c0_112 = arith.constant 0 : index
    %c0_113 = arith.constant 0 : index
    %198 = vector.load %arg12[%c3, %c0_112, %c0_113] : memref<4x128x8xbf16, #tpu.memory_space<vmem>>, vector<1x128x8xbf16>
    %199 = vector.shape_cast %198 : vector<1x128x8xbf16> to vector<128x8xbf16>
    %cst_114 = arith.constant dense<0.000000e+00> : vector<16x8xf32>
    %200 = tpu.matmul %1, %199, %cst_114 {dimension_numbers = #tpu.dot_dimension_numbers<[1], [0], [0], [1], [0, 0, 1, 1], [], []>} : vector<16x128xbf16>, vector<128x8xbf16>, vector<16x8xf32> -> vector<16x8xf32>
    %c3_115 = arith.constant 3 : index
    %c0_116 = arith.constant 0 : index
    %c0_117 = arith.constant 0 : index
    %201 = vector.load %arg13[%c3_115, %c0_116, %c0_117] : memref<4x1x8xf32, #tpu.memory_space<vmem>>, vector<1x1x8xf32>
    %202 = vector.shape_cast %201 : vector<1x1x8xf32> to vector<1x8xf32>
    %203 = vector.broadcast %202 : vector<1x8xf32> to vector<16x8xf32>
    %204 = arith.addf %200, %203 : vector<16x8xf32>
    %cst_118 = arith.constant 0.353553385 : f32
    %205 = vector.broadcast %cst_118 : f32 to vector<16x8xf32>
    %206 = arith.mulf %204, %205 : vector<16x8xf32>
    %c3_119 = arith.constant 3 : index
    %c0_120 = arith.constant 0 : index
    %c0_121 = arith.constant 0 : index
    %207 = vector.load %arg14[%c3_119, %c0_120, %c0_121] : memref<4x128x8xbf16, #tpu.memory_space<vmem>>, vector<1x128x8xbf16>
    %208 = vector.shape_cast %207 : vector<1x128x8xbf16> to vector<128x8xbf16>
    %cst_122 = arith.constant dense<0.000000e+00> : vector<16x8xf32>
    %209 = tpu.matmul %1, %208, %cst_122 {dimension_numbers = #tpu.dot_dimension_numbers<[1], [0], [0], [1], [0, 0, 1, 1], [], []>} : vector<16x128xbf16>, vector<128x8xbf16>, vector<16x8xf32> -> vector<16x8xf32>
    %c3_123 = arith.constant 3 : index
    %c0_124 = arith.constant 0 : index
    %c0_125 = arith.constant 0 : index
    %210 = vector.load %arg15[%c3_123, %c0_124, %c0_125] : memref<4x1x8xf32, #tpu.memory_space<vmem>>, vector<1x1x8xf32>
    %211 = vector.shape_cast %210 : vector<1x1x8xf32> to vector<1x8xf32>
    %212 = vector.broadcast %211 : vector<1x8xf32> to vector<16x8xf32>
    %213 = arith.addf %209, %212 : vector<16x8xf32>
    %214 = arith.truncf %206 : vector<16x8xf32> to vector<16x8xbf16>
    %215 = arith.truncf %213 : vector<16x8xf32> to vector<16x8xbf16>
    %cst_126 = arith.constant dense<0.000000e+00> : vector<16x16xf32>
    %216 = tpu.matmul %214, %215, %cst_126 {dimension_numbers = #tpu.dot_dimension_numbers<[1], [1], [0], [0], [0, 0, 1, 0], [], []>} : vector<16x8xbf16>, vector<16x8xbf16>, vector<16x16xf32> -> vector<16x16xf32>
    %cst_127 = arith.constant -1.000000e+30 : f32
    %217 = vector.broadcast %cst_127 : f32 to vector<16x16xf32>
    %218 = arith.select %85, %216, %217 : vector<16x16xi1>, vector<16x16xf32>
    %cst_128 = arith.constant dense<0xFF800000> : vector<16xf32>
    %219 = vector.multi_reduction <maximumf>, %218, %cst_128 [1] : vector<16x16xf32> to vector<16xf32>
    %220 = vector.shape_cast %219 : vector<16xf32> to vector<16x1xf32>
    %221 = vector.broadcast %220 : vector<16x1xf32> to vector<16x16xf32>
    %222 = arith.subf %218, %221 : vector<16x16xf32>
    %223 = math.exp %222 : vector<16x16xf32>
    %cst_129 = arith.constant dense<0.000000e+00> : vector<16xf32>
    %224 = vector.multi_reduction <add>, %223, %cst_129 [1] : vector<16x16xf32> to vector<16xf32>
    %225 = vector.shape_cast %224 : vector<16xf32> to vector<16x1xf32>
    %226 = vector.broadcast %225 : vector<16x1xf32> to vector<16x16xf32>
    %227 = arith.divf %223, %226 : vector<16x16xf32>
    %c3_130 = arith.constant 3 : index
    %c0_131 = arith.constant 0 : index
    %c0_132 = arith.constant 0 : index
    %228 = vector.load %arg16[%c3_130, %c0_131, %c0_132] : memref<4x128x128xbf16, #tpu.memory_space<vmem>>, vector<1x128x128xbf16>
    %229 = vector.shape_cast %228 : vector<1x128x128xbf16> to vector<128x128xbf16>
    %cst_133 = arith.constant dense<0.000000e+00> : vector<16x128xf32>
    %230 = tpu.matmul %1, %229, %cst_133 {dimension_numbers = #tpu.dot_dimension_numbers<[1], [0], [0], [1], [0, 0, 1, 1], [], []>} : vector<16x128xbf16>, vector<128x128xbf16>, vector<16x128xf32> -> vector<16x128xf32>
    %231 = arith.truncf %227 : vector<16x16xf32> to vector<16x16xbf16>
    %232 = arith.truncf %230 : vector<16x128xf32> to vector<16x128xbf16>
    %cst_134 = arith.constant dense<0.000000e+00> : vector<16x128xf32>
    %233 = tpu.matmul %231, %232, %cst_134 {dimension_numbers = #tpu.dot_dimension_numbers<[1], [0], [0], [1], [0, 0, 1, 1], [], []>} : vector<16x16xbf16>, vector<16x128xbf16>, vector<16x128xf32> -> vector<16x128xf32>
    %234 = arith.addf %197, %233 : vector<16x128xf32>
    %c0_135 = arith.constant 0 : index
    %c0_136 = arith.constant 0 : index
    %235 = vector.load %arg17[%c0_135, %c0_136] : memref<1x128xf32, #tpu.memory_space<vmem>>, vector<1x128xf32>
    %236 = vector.broadcast %235 : vector<1x128xf32> to vector<16x128xf32>
    %237 = arith.addf %234, %236 : vector<16x128xf32>
    %238 = arith.addf %0, %237 : vector<16x128xf32>
    %c0_137 = arith.constant 0 : index
    %c0_138 = arith.constant 0 : index
    %239 = vector.load %arg18[%c0_137, %c0_138] : memref<1x128xf32, #tpu.memory_space<vmem>>, vector<1x128xf32>
    %c0_139 = arith.constant 0 : index
    %c0_140 = arith.constant 0 : index
    %240 = vector.load %arg19[%c0_139, %c0_140] : memref<1x128xf32, #tpu.memory_space<vmem>>, vector<1x128xf32>
    %241 = arith.mulf %238, %11 : vector<16x128xf32>
    %242 = vector.shape_cast %241 : vector<16x128xf32> to vector<1x16x128xf32>
    %cst_141 = arith.constant dense<0.000000e+00> : vector<1xf32>
    %243 = vector.multi_reduction <add>, %242, %cst_141 [1, 2] : vector<1x16x128xf32> to vector<1xf32>
    %244 = vector.shape_cast %243 : vector<1xf32> to vector<1x1x1xf32>
    %245 = vector.extract %244[0, 0, 0] : f32 from vector<1x1x1xf32>
    %cst_142 = arith.constant 0.001953125 : f32
    %246 = arith.mulf %245, %cst_142 : f32
    %247 = vector.broadcast %246 : f32 to vector<16x128xf32>
    %248 = arith.subf %238, %247 : vector<16x128xf32>
    %249 = arith.mulf %248, %11 : vector<16x128xf32>
    %250 = arith.mulf %249, %249 : vector<16x128xf32>
    %251 = vector.shape_cast %250 : vector<16x128xf32> to vector<1x16x128xf32>
    %cst_143 = arith.constant dense<0.000000e+00> : vector<1xf32>
    %252 = vector.multi_reduction <add>, %251, %cst_143 [1, 2] : vector<1x16x128xf32> to vector<1xf32>
    %253 = vector.shape_cast %252 : vector<1xf32> to vector<1x1x1xf32>
    %254 = vector.extract %253[0, 0, 0] : f32 from vector<1x1x1xf32>
    %cst_144 = arith.constant 0.001953125 : f32
    %255 = arith.mulf %254, %cst_144 : f32
    %256 = vector.broadcast %246 : f32 to vector<16x128xf32>
    %257 = arith.subf %238, %256 : vector<16x128xf32>
    %cst_145 = arith.constant 9.99999974E-6 : f32
    %258 = arith.addf %255, %cst_145 : f32
    %259 = math.rsqrt %258 : f32
    %260 = vector.broadcast %259 : f32 to vector<16x128xf32>
    %261 = arith.mulf %257, %260 : vector<16x128xf32>
    %262 = vector.broadcast %239 : vector<1x128xf32> to vector<16x128xf32>
    %263 = arith.mulf %261, %262 : vector<16x128xf32>
    %264 = vector.broadcast %240 : vector<1x128xf32> to vector<16x128xf32>
    %265 = arith.addf %263, %264 : vector<16x128xf32>
    %266 = arith.addf %82, %265 : vector<16x128xf32>
    %c0_146 = arith.constant 0 : index
    %c0_147 = arith.constant 0 : index
    %267 = vector.load %arg20[%c0_146, %c0_147] : memref<128x128xbf16, #tpu.memory_space<vmem>>, vector<128x128xbf16>
    %268 = arith.truncf %266 : vector<16x128xf32> to vector<16x128xbf16>
    %cst_148 = arith.constant dense<0.000000e+00> : vector<16x128xf32>
    %269 = tpu.matmul %268, %267, %cst_148 {dimension_numbers = #tpu.dot_dimension_numbers<[1], [0], [0], [1], [0, 0, 1, 1], [], []>} : vector<16x128xbf16>, vector<128x128xbf16>, vector<16x128xf32> -> vector<16x128xf32>
    %c0_149 = arith.constant 0 : index
    %c0_150 = arith.constant 0 : index
    %270 = vector.load %arg21[%c0_149, %c0_150] : memref<1x128xf32, #tpu.memory_space<vmem>>, vector<1x128xf32>
    %271 = vector.broadcast %270 : vector<1x128xf32> to vector<16x128xf32>
    %272 = arith.addf %269, %271 : vector<16x128xf32>
    %cst_151 = arith.constant 0.000000e+00 : f32
    %273 = vector.broadcast %cst_151 : f32 to vector<16x128xf32>
    %274 = arith.maximumf %272, %273 : vector<16x128xf32>
    %c0_152 = arith.constant 0 : index
    %c0_153 = arith.constant 0 : index
    %275 = vector.load %arg22[%c0_152, %c0_153] : memref<128x128xbf16, #tpu.memory_space<vmem>>, vector<128x128xbf16>
    %276 = arith.truncf %274 : vector<16x128xf32> to vector<16x128xbf16>
    %cst_154 = arith.constant dense<0.000000e+00> : vector<16x128xf32>
    %277 = tpu.matmul %276, %275, %cst_154 {dimension_numbers = #tpu.dot_dimension_numbers<[1], [0], [0], [1], [0, 0, 1, 1], [], []>} : vector<16x128xbf16>, vector<128x128xbf16>, vector<16x128xf32> -> vector<16x128xf32>
    %c0_155 = arith.constant 0 : index
    %c0_156 = arith.constant 0 : index
    %278 = vector.load %arg23[%c0_155, %c0_156] : memref<1x128xf32, #tpu.memory_space<vmem>>, vector<1x128xf32>
    %279 = vector.broadcast %278 : vector<1x128xf32> to vector<16x128xf32>
    %280 = arith.addf %277, %279 : vector<16x128xf32>
    %281 = arith.addf %266, %280 : vector<16x128xf32>
    %c0_157 = arith.constant 0 : index
    %c0_158 = arith.constant 0 : index
    %282 = vector.load %arg24[%c0_157, %c0_158] : memref<1x128xf32, #tpu.memory_space<vmem>>, vector<1x128xf32>
    %c0_159 = arith.constant 0 : index
    %c0_160 = arith.constant 0 : index
    %283 = vector.load %arg25[%c0_159, %c0_160] : memref<1x128xf32, #tpu.memory_space<vmem>>, vector<1x128xf32>
    %284 = arith.mulf %281, %11 : vector<16x128xf32>
    %285 = vector.shape_cast %284 : vector<16x128xf32> to vector<1x16x128xf32>
    %cst_161 = arith.constant dense<0.000000e+00> : vector<1xf32>
    %286 = vector.multi_reduction <add>, %285, %cst_161 [1, 2] : vector<1x16x128xf32> to vector<1xf32>
    %287 = vector.shape_cast %286 : vector<1xf32> to vector<1x1x1xf32>
    %288 = vector.extract %287[0, 0, 0] : f32 from vector<1x1x1xf32>
    %cst_162 = arith.constant 0.001953125 : f32
    %289 = arith.mulf %288, %cst_162 : f32
    %290 = vector.broadcast %289 : f32 to vector<16x128xf32>
    %291 = arith.subf %281, %290 : vector<16x128xf32>
    %292 = arith.mulf %291, %11 : vector<16x128xf32>
    %293 = arith.mulf %292, %292 : vector<16x128xf32>
    %294 = vector.shape_cast %293 : vector<16x128xf32> to vector<1x16x128xf32>
    %cst_163 = arith.constant dense<0.000000e+00> : vector<1xf32>
    %295 = vector.multi_reduction <add>, %294, %cst_163 [1, 2] : vector<1x16x128xf32> to vector<1xf32>
    %296 = vector.shape_cast %295 : vector<1xf32> to vector<1x1x1xf32>
    %297 = vector.extract %296[0, 0, 0] : f32 from vector<1x1x1xf32>
    %cst_164 = arith.constant 0.001953125 : f32
    %298 = arith.mulf %297, %cst_164 : f32
    %299 = vector.broadcast %289 : f32 to vector<16x128xf32>
    %300 = arith.subf %281, %299 : vector<16x128xf32>
    %cst_165 = arith.constant 9.99999974E-6 : f32
    %301 = arith.addf %298, %cst_165 : f32
    %302 = math.rsqrt %301 : f32
    %303 = vector.broadcast %302 : f32 to vector<16x128xf32>
    %304 = arith.mulf %300, %303 : vector<16x128xf32>
    %305 = vector.broadcast %282 : vector<1x128xf32> to vector<16x128xf32>
    %306 = arith.mulf %304, %305 : vector<16x128xf32>
    %307 = vector.broadcast %283 : vector<1x128xf32> to vector<16x128xf32>
    %308 = arith.addf %306, %307 : vector<16x128xf32>
    %c0_166 = arith.constant 0 : index
    %c0_167 = arith.constant 0 : index
    %309 = vector.load %arg26[%c0_166, %c0_167] : memref<16x128xf32, #tpu.memory_space<vmem>>, vector<16x128xf32>
    tpu.vector_store %arg26[%c0_166, %c0_167], %308 {strides = array<i32>} : memref<16x128xf32, #tpu.memory_space<vmem>>, vector<16x128xf32>,
    return
  }
}

</mosaic_0001>

<bundles_post_ra>
// kernel: tpu_custom_call.1
= control target key start
LH: loop header
LB: loop body
LE: loop exit
PB: predicated region body
PF: predicated region fallthrough
CT: control target
= control target key end

     0   :  { %s5349_s0 = inlined_call_operand.vmem [shape: f32[16,128], index: 0, kind: input, shape index: {}]   ;;  %s5350_s1 = inlined_call_operand.vmem [shape: s32[128,1], index: 1, kind: input, shape index: {}]   ;;  %s5351_s2 = inlined_call_operand.vmem [shape: s32[1,128], index: 2, kind: input, shape index: {}]   ;;  %s5352_s3 = inlined_call_operand.vmem [shape: bf16[128,8], index: 3, kind: input, shape index: {}]   ;;  %s5353_s4 = inlined_call_operand.vmem [shape: bf16[8,128], index: 4, kind: input, shape index: {}]   ;;  %s5354_s5 = inlined_call_operand.vmem [shape: f32[1,128], index: 5, kind: input, shape index: {}]   ;;  %s5355_s6 = inlined_call_operand.vmem [shape: bf16[128,128], index: 6, kind: input, shape index: {}]   ;;  %s5356_s7 = inlined_call_operand.vmem [shape: f32[1,128], index: 7, kind: input, shape index: {}]   ;;  %s5357_s8 = inlined_call_operand.vmem [shape: bf16[128,128], index: 8, kind: input, shape index: {}]   ;;  %s5358_s9 = inlined_call_operand.vmem [shape: f32[1,128], index: 9, kind: input, shape index: {}]   ;;  %s5359_s10 = inlined_call_operand.vmem [shape: f32[1,128], index: 10, kind: input, shape index: {}]   ;;  %s5360_s11 = inlined_call_operand.vmem [shape: f32[1,128], index: 11, kind: input, shape index: {}]   ;;  %s5361_s12 = inlined_call_operand.vmem [shape: bf16[4,128,8], index: 12, kind: input, shape index: {}]   ;;  %s5362_s13 = inlined_call_operand.vmem [shape: f32[4,1,8], index: 13, kind: input, shape index: {}]   ;;  %s5363_s14 = inlined_call_operand.vmem [shape: bf16[4,128,8], index: 14, kind: input, shape index: {}]   ;;  %s5364_s15 = inlined_call_operand.vmem [shape: f32[4,1,8], index: 15, kind: input, shape index: {}]   ;;  %s5365_s16 = inlined_call_operand.vmem [shape: bf16[4,128,128], index: 16, kind: input, shape index: {}]   ;;  %s5366_s17 = inlined_call_operand.vmem [shape: f32[1,128], index: 17, kind: input, shape index: {}]   ;;  %s5367_s18 = inlined_call_operand.vmem [shape: f32[1,128], index: 18, kind: input, shape index: {}]   ;;  %s5368_s19 = inlined_call_operand.vmem [shape: f32[1,128], index: 19, kind: input, shape index: {}]   ;;  %s5369_s20 = inlined_call_operand.vmem [shape: bf16[128,128], index: 20, kind: input, shape index: {}]   ;;  %s5370_s21 = inlined_call_operand.vmem [shape: f32[1,128], index: 21, kind: input, shape index: {}]   ;;  %s5371_s22 = inlined_call_operand.vmem [shape: bf16[128,128], index: 22, kind: input, shape index: {}]   ;;  %s5372_s23 = inlined_call_operand.vmem [shape: f32[1,128], index: 23, kind: input, shape index: {}]   ;;  %s5373_s24 = inlined_call_operand.vmem [shape: f32[1,128], index: 24, kind: input, shape index: {}]   ;;  %s5374_s25 = inlined_call_operand.vmem [shape: f32[1,128], index: 25, kind: input, shape index: {}]   ;;  %s5375_s26 = inlined_call_operand.hbm [shape: f32[16,128], index: 26, kind: output, shape index: {}]  }
   0x1   :  { %5381 = sst [smem:[#allocation5_spill]] %s5349_s0 }
   0x2   :  { %5382 = sst [smem:[#allocation6_spill]] %s5350_s1 }
   0x3   :  { %5383 = sst [smem:[#allocation7_spill]] %s5351_s2 }
   0x4   :  { %5384 = sst [smem:[#allocation8_spill]] %s5352_s3 }
   0x5   :  { %5385 = sst [smem:[#allocation9_spill]] %s5353_s4 }
   0x6   :  { %5386 = sst [smem:[#allocation10_spill]] %s5354_s5 }
   0x7   :  { %5387 = sst [smem:[#allocation11_spill]] %s5355_s6 }
   0x8   :  { %5388 = sst [smem:[#allocation12_spill]] %s5356_s7 }
   0x9   :  { %5389 = sst [smem:[#allocation13_spill]] %s5357_s8 }
   0xa   :  { %5390 = sst [smem:[#allocation14_spill]] %s5358_s9 }
   0xb   :  { %5391 = sst [smem:[#allocation15_spill]] %s5359_s10 }
   0xc   :  { %s5392_s7 = sld [smem:[#allocation6_spill]]  ;;  %v4276_v2 = vmov 0   ;;  %vm303_vm0 = vcmask 1043456   ;;  %v4277_v5 = vmov 0.0   ;;  %s5393_s27 = sld [smem:[#allocation9_spill]]  ;;  %vm278_vm1 = vcmask 64512  }
   0xd   :  { %4075 = vset.pattern.permute.xlu1 %v4276_v2  ;;  %4074 = vset.pattern.permute.xlu0 %v4276_v2  ;;  %s5394_s8 = sld [smem:[#allocation8_spill]]  ;;  %s5395_s30 = sld [smem:[#allocation5_spill]] }
   0xe   :  { %3628 = vmatprep.subr.bf16.mxu1 %v4277_v5 }
  0x12   :  { %v102_v0 = vld [vmem:[%s5392_s7 + $0x10] sm:$0xff]  ;;  %v100_v1 = vld [vmem:[%s5392_s7] sm:$0xff]  ;;  %v103_v3 = vld [vmem:[%s5392_s7 + $0x18] sm:$0xff] }
  0x13   :  { %123 = vperm.xlu1 %4075, %v102_v0   ;;  %117 = vperm.xlu0 %4074, %v100_v1   ;;  %v101_v4 = vld [vmem:[%s5392_s7 + $0x8] sm:$0xff]  ;;  %v104_v7 = vld [vmem:[%s5392_s7 + $0x20] sm:$0xff]  ;;  %v4078_v15 = vld [vmem:[%s5394_s8 + $0x10] sm:$0xff]  }
  0x14   :  { %v105_v6 = vld [vmem:[%s5392_s7 + $0x28] sm:$0xff]  ;;  %v230_v8 = vld [vmem:[%s5393_s27] sm:$0xf]  ;;  %v107_v16 = vld [vmem:[%s5392_s7 + $0x38] sm:$0xff] }
  0x15   :  { %v305_v9 = vsel %vm303_vm0, %v230_v8, 0  ;;  %v4076_v10 = vld [vmem:[%s5394_s8] sm:$0xff]   ;;  %4048 = vmatprep.subr.msk.bf16.mxu0 %vm303_vm0, %v230_v8  ;;  %v4077_v11 = vld [vmem:[%s5394_s8 + $0x8] sm:$0xff]   ;;  %v106_v17 = vld [vmem:[%s5392_s7 + $0x30] sm:$0xff] }
  0x16   :  { %v4449_v12 = vld [vmem:[%s5395_s30] sm:$0xff]  ;;  %3593 = vmatpush3.bf16.msra.mxu0 %v305_v9  ;;  %3594 = vmatprep.mubr.msk.bf16.mxu0 %vm278_vm1, %v4076_v10  ;;  %v4455_v13 = vld [vmem:[%s5395_s30 + $0x8] sm:$0xff]  ;;  %v4079_v20 = vld [vmem:[%s5394_s8 + $0x18] sm:$0xff]  }
  0x17   :  { %126 = vperm.xlu1 %4075, %v103_v3   ;;  %120 = vperm.xlu0 %4074, %v101_v4   ;;  %v4459_v14 = vpack.c.bf16 %v4455_v13, %v4449_v12  ;;  %v109_v18 = vld [vmem:[%s5392_s7 + $0x48] sm:$0xff]  ;;  %v108_v19 = vld [vmem:[%s5392_s7 + $0x40] sm:$0xff]  ;;  %v111_v22 = vld [vmem:[%s5392_s7 + $0x58] sm:$0xff] }
  0x18   :  { %v4080_v21 = vld [vmem:[%s5394_s8 + $0x20] sm:$0xff]   ;;  %v110_v23 = vld [vmem:[%s5392_s7 + $0x50] sm:$0xff]  ;;  %v113_v24 = vld [vmem:[%s5392_s7 + $0x68] sm:$0xff] }
  0x19   :  { %3595 = vmatmul.mubr.msk.bf16.vlgmr.msra.gmra.mrb[0].mxu0 %vm278_vm1, %v4077_v11  ;;  %3610 = vmatprep.subr.bf16.mxu0 %v4459_v14  ;;  %v112_v25 = vld [vmem:[%s5392_s7 + $0x60] sm:$0xff]  ;;  %v4081_v26 = vld [vmem:[%s5394_s8 + $0x28] sm:$0xff]   ;;  %v4082_v27 = vld [vmem:[%s5394_s8 + $0x30] sm:$0xff]  }
  0x1a   :  { %3611 = vmatpush3.bf16.msra.mxu0 %v4459_v14  ;;  %3598 = vmatprep.mubr.msk.bf16.mxu0 %vm278_vm1, %v4078_v15  ;;  %v115_v28 = vld [vmem:[%s5392_s7 + $0x78] sm:$0xff]  ;;  %v114_v29 = vld [vmem:[%s5392_s7 + $0x70] sm:$0xff] }
  0x1b   :  { %132 = vperm.xlu1 %4075, %v105_v6   ;;  %129 = vperm.xlu0 %4074, %v104_v7   ;;  %v4083_v30 = vld [vmem:[%s5394_s8 + $0x38] sm:$0xff]  }
  0x1c   :  { %3668 = vmatprep.subr.bf16.mxu0 %v4277_v5 }
  0x1f   :  { %138 = vperm.xlu1 %4075, %v107_v16   ;;  %135 = vperm.xlu0 %4074, %v106_v17  }
  0x21   :  { %3599 = vmatmul.mubr.msk.bf16.gmra.mrb[4].mxu0 %vm278_vm1, %v4079_v20 }
  0x22   :  { %3602 = vmatprep.mubr.msk.bf16.mxu0 %vm278_vm1, %v4080_v21 }
  0x23   :  { %144 = vperm.xlu1 %4075, %v109_v18   ;;  %141 = vperm.xlu0 %4074, %v108_v19  }
  0x27   :  { %150 = vperm.xlu1 %4075, %v111_v22   ;;  %147 = vperm.xlu0 %4074, %v110_v23  }
  0x29   :  { %3603 = vmatmul.mubr.msk.bf16.gmra.mrb[8].mxu0 %vm278_vm1, %v4081_v26 }
  0x2a   :  { %3606 = vmatprep.mubr.msk.bf16.mxu0 %vm278_vm1, %v4082_v27 }
  0x2b   :  { %156 = vperm.xlu1 %4075, %v113_v24   ;;  %153 = vperm.xlu0 %4074, %v112_v25  }
  0x2f   :  { %162 = vperm.xlu1 %4075, %v115_v28   ;;  %159 = vperm.xlu0 %4074, %v114_v29  }
  0x31   :  { %3607 = vmatmul.mubr.msk.bf16.gmra.mrb[12].mxu0 %vm278_vm1, %v4083_v30 }
  0x32   :  { %31 = vsyncpa [#allocation3], 0  ;;  %v88_v31 = vlaneseq  ;;  %vm404_vm6 = vcmask 130048   ;;  %s5396_s0 = sld [smem:[#allocation10_spill]]  ;;  %s5397_s5 = sld [smem:[#allocation7_spill]] }
  0x33   :  { %s5398_s1 = sld [smem:[#allocation11_spill]]  ;;  %s5399_s4 = sld [smem:[#allocation13_spill]] }
  0x34   :  { %v4520_v32 = vand.u32 127, %v88_v31  ;;  %s5400_s9 = sld [smem:[#allocation12_spill]] }
  0x38   :  { %v3073_v10 = vld [vmem:[%s5396_s0] ss:$0 sm:$0xff] }
  0x92   :  { %v124_v33 = vpop.permute.xlu1 %123  ;;  %v118_v34 = vpop.permute.xlu0 %117 }
  0x93   :  { %vm166_vm2 = vcmp.eq.s32.totalorder %v124_v33, %v4520_v32  ;;  %vm164_vm3 = vcmp.eq.s32.totalorder %v118_v34, %v4520_v32 }
  0x94   :  { %v182_v37 = vsel %vm166_vm2, 1.0, %v4277_v5  ;;  %v180_v38 = vsel %vm164_vm3, 1.0, %v4277_v5 }
  0x96   :  { %v127_v35 = vpop.permute.xlu1 %126  ;;  %v121_v36 = vpop.permute.xlu0 %120 }
  0x97   :  { %vm167_vm4 = vcmp.eq.s32.totalorder %v127_v35, %v4520_v32  ;;  %vm165_vm5 = vcmp.eq.s32.totalorder %v121_v36, %v4520_v32 }
  0x98   :  { %v183_v39 = vsel %vm167_vm4, 1.0, %v4277_v5  ;;  %v181_v40 = vsel %vm165_vm5, 1.0, %v4277_v5  ;;  %vm4278_vm4 = vmmov 0  }
  0x99   :  { %v197_v41 = vpack.c.bf16 %v183_v39, %v182_v37  ;;  %v196_v42 = vpack.c.bf16 %v181_v40, %v180_v38  ;;  %3644 = vmatprep.mubr.msk.bf16.mxu1 %vm4278_vm4, %v4277_v5 }
  0x9a   :  { %v133_v43 = vpop.permute.xlu1 %132  ;;  %v130_v44 = vpop.permute.xlu0 %129 }
  0x9b   :  { %vm169_vm7 = vcmp.eq.s32.totalorder %v133_v43, %v4520_v32  ;;  %vm168_vm8 = vcmp.eq.s32.totalorder %v130_v44, %v4520_v32  ;;  %3612 = vmatprep.mubr.msk.bf16.mxu0 %vm404_vm6, %v196_v42 }
  0x9c   :  { %v185_v45 = vsel %vm169_vm7, 1.0, %v4277_v5  ;;  %v184_v46 = vsel %vm168_vm8, 1.0, %v4277_v5  ;;  %3613 = vmatmul.mubr.msk.bf16.vlgmr.msra.gmra.mrb[0].mxu0 %vm404_vm6, %v197_v41 }
  0x9d   :  { %v198_v47 = vpack.c.bf16 %v185_v45, %v184_v46 }
  0x9e   :  { %v139_v48 = vpop.permute.xlu1 %138  ;;  %v136_v49 = vpop.permute.xlu0 %135 }
  0x9f   :  { %vm171_vm9 = vcmp.eq.s32.totalorder %v139_v48, %v4520_v32  ;;  %vm170_vm10 = vcmp.eq.s32.totalorder %v136_v49, %v4520_v32  ;;  %3616 = vmatprep.mubr.msk.bf16.mxu0 %vm404_vm6, %v198_v47 }
  0xa0   :  { %v187_v50 = vsel %vm171_vm9, 1.0, %v4277_v5  ;;  %v186_v51 = vsel %vm170_vm10, 1.0, %v4277_v5  ;;  %vm879_vm9 = vcmp.lt.s32.totalorder %v4520_v32, 16 }
  0xa1   :  { %v199_v52 = vpack.c.bf16 %v187_v50, %v186_v51 }
  0xa2   :  { %v145_v53 = vpop.permute.xlu1 %144  ;;  %v142_v54 = vpop.permute.xlu0 %141 }
  0xa3   :  { %vm173_vm11 = vcmp.eq.s32.totalorder %v145_v53, %v4520_v32  ;;  %vm172_vm12 = vcmp.eq.s32.totalorder %v142_v54, %v4520_v32 }
  0xa4   :  { %v189_v55 = vsel %vm173_vm11, 1.0, %v4277_v5  ;;  %v188_v56 = vsel %vm172_vm12, 1.0, %v4277_v5  ;;  %3617 = vmatmul.mubr.msk.bf16.gmra.mrb[4].mxu0 %vm404_vm6, %v199_v52 }
  0xa5   :  { %v200_v57 = vpack.c.bf16 %v189_v55, %v188_v56 }
  0xa6   :  { %v151_v58 = vpop.permute.xlu1 %150  ;;  %v148_v59 = vpop.permute.xlu0 %147 }
  0xa7   :  { %vm175_vm13 = vcmp.eq.s32.totalorder %v151_v58, %v4520_v32  ;;  %vm174_vm14 = vcmp.eq.s32.totalorder %v148_v59, %v4520_v32  ;;  %3620 = vmatprep.mubr.msk.bf16.mxu0 %vm404_vm6, %v200_v57 }
  0xa8   :  { %v191_v60 = vsel %vm175_vm13, 1.0, %v4277_v5  ;;  %v190_v61 = vsel %vm174_vm14, 1.0, %v4277_v5 }
  0xa9   :  { %v201_v62 = vpack.c.bf16 %v191_v60, %v190_v61 }
  0xaa   :  { %v157_v63 = vpop.permute.xlu1 %156  ;;  %v154_v0 = vpop.permute.xlu0 %153 }
  0xab   :  { %vm177_vm15 = vcmp.eq.s32.totalorder %v157_v63, %v4520_v32  ;;  %vm176_vm0 = vcmp.eq.s32.totalorder %v154_v0, %v4520_v32 }
  0xac   :  { %v193_v1 = vsel %vm177_vm15, 1.0, %v4277_v5  ;;  %v192_v2 = vsel %vm176_vm0, 1.0, %v4277_v5  ;;  %3621 = vmatmul.mubr.msk.bf16.gmra.mrb[8].mxu0 %vm404_vm6, %v201_v62 }
  0xad   :  { %v202_v3 = vpack.c.bf16 %v193_v1, %v192_v2  ;;  %v89_v1 = vshrl.u32 %v88_v31, 7  ;;  %v4084_v31 = vld [vmem:[%s5398_s1] sm:$0xff]  }
  0xae   :  { %v163_v4 = vpop.permute.xlu1 %162  ;;  %v160_v6 = vpop.permute.xlu0 %159 }
  0xaf   :  { %vm179_vm2 = vcmp.eq.s32.totalorder %v163_v4, %v4520_v32  ;;  %vm178_vm3 = vcmp.eq.s32.totalorder %v160_v6, %v4520_v32  ;;  %3624 = vmatprep.mubr.msk.bf16.mxu0 %vm404_vm6, %v202_v3 }
  0xb0   :  { %v195_v7 = vsel %vm179_vm2, 1.0, %v4277_v5  ;;  %v194_v8 = vsel %vm178_vm3, 1.0, %v4277_v5 }
  0xb1   :  { %v203_v9 = vpack.c.bf16 %v195_v7, %v194_v8 }
  0xb4   :  { %3625 = vmatmul.mubr.msk.bf16.gmra.mrb[12].mxu0 %vm404_vm6, %v203_v9  ;;  %v90_v9 = vadd.s32 8, %v89_v1 }
  0xb5   :  { %3684 = vmatprep.mubr.msk.bf16.mxu0 %vm4278_vm4, %v4277_v5 }
 0x16f   :  { %v3614_v11 = vpop.f32.mrb[0].mxu0 }
 0x170   :  { %v4016_v15 = vadd.f32 %v3614_v11, %v3073_v10  ;;  %v463_v16 = vpop.f32.mrb[1].mxu0 }
 0x171   :  { %v4017_v17 = vadd.f32 %v3073_v10, %v463_v16  ;;  %v3615_v18 = vpop.f32.mrb[2].mxu0  ;;  %v4085_v16 = vld [vmem:[%s5398_s1 + $0x8] sm:$0xff]  }
 0x172   :  { %v4018_v19 = vadd.f32 %v3615_v18, %v3073_v10  ;;  %v466_v20 = vpop.f32.mrb[3].mxu0  ;;  %v528_v22 = vmax.f32 %v4016_v15, 0.0  ;;  %v3072_v15 = vld [vmem:[%s5397_s5] ss:$0 sm:$0xff]  ;;  %v4087_v18 = vld [vmem:[%s5398_s1 + $0x18] sm:$0xff]  }
 0x173   :  { %v4019_v21 = vadd.f32 %v3073_v10, %v466_v20  ;;  %v526_v24 = vmax.f32 %v4017_v17, 0.0  ;;  %vm209_vm5 = vcmp.eq.s32.totalorder %v89_v1, %v3072_v15  ;;  %vm210_vm7 = vcmp.eq.s32.totalorder %v90_v9, %v3072_v15  ;;  %v4086_v17 = vld [vmem:[%s5398_s1 + $0x10] sm:$0xff]   ;;  %v4089_v20 = vld [vmem:[%s5398_s1 + $0x28] sm:$0xff]   ;;  %v3120_v1 = vld [vmem:[%s5362_s13] ss:$0 sm:$0xff] }
 0x174   :  { %v529_v23 = vmax.f32 %v4018_v19, 0.0  ;;  %vm3098_vm8 = vmpackc.low %vm210_vm7, %vm209_vm5  ;;  %v4088_v19 = vld [vmem:[%s5398_s1 + $0x20] sm:$0xff]  }
 0x175   :  { %v527_v25 = vmax.f32 %v4019_v21, 0.0  ;;  %v4090_v21 = vld [vmem:[%s5398_s1 + $0x30] sm:$0xff]   ;;  %v4125_v15 = vld [vmem:[%s5361_s12 + $0x40] sm:$0xff]  }
 0x176   :  { %v543_v26 = vpack.c.bf16 %v529_v23, %v528_v22  ;;  %v4091_v22 = vld [vmem:[%s5398_s1 + $0x38] sm:$0xff]   ;;  %v4092_v23 = vld [vmem:[%s5399_s4] sm:$0xff]  }
 0x177   :  { %v3618_v27 = vpop.f32.mrb[4].mxu0  ;;  %v542_v28 = vpack.c.bf16 %v527_v25, %v526_v24  ;;  %3669 = vmatpush3.bf16.msra.mxu0 %v4092_v23  ;;  %v4093_v24 = vld [vmem:[%s5399_s4 + $0x8] sm:$0xff]   ;;  %v4094_v25 = vld [vmem:[%s5399_s4 + $0x10] sm:$0xff]  }
 0x178   :  { %v4020_v29 = vadd.f32 %v3618_v27, %v3073_v10  ;;  %v479_v30 = vpop.f32.mrb[5].mxu0  ;;  %3670 = vmatprep.subr.bf16.mxu0 %v4277_v5  ;;  %v4096_v27 = vld [vmem:[%s5399_s4 + $0x20] sm:$0xff]  }
 0x179   :  { %v4021_v33 = vadd.f32 %v3073_v10, %v479_v30  ;;  %v3619_v34 = vpop.f32.mrb[6].mxu0  ;;  %3629 = vmatpush3.bf16.msra.mxu1 %v542_v28  ;;  %v4097_v28 = vld [vmem:[%s5399_s4 + $0x28] sm:$0xff]  }
 0x17a   :  { %v4022_v35 = vadd.f32 %v3619_v34, %v3073_v10  ;;  %v482_v36 = vpop.f32.mrb[7].mxu0  ;;  %3630 = vmatprep.subr.bf16.mxu1 %v4277_v5  ;;  %v532_v38 = vmax.f32 %v4020_v29, 0.0 }
 0x17b   :  { %v4023_v37 = vadd.f32 %v3073_v10, %v482_v36  ;;  %v530_v40 = vmax.f32 %v4021_v33, 0.0  ;;  %3671 = vmatpush3.bf16.msra.mxu0 %v4093_v24 }
 0x17c   :  { %v533_v39 = vmax.f32 %v4022_v35, 0.0  ;;  %3672 = vmatprep.subr.bf16.mxu0 %v4277_v5 }
 0x17d   :  { %v531_v41 = vmax.f32 %v4023_v37, 0.0  ;;  %3631 = vmatpush3.bf16.msra.mxu1 %v543_v26  ;;  %v4095_v26 = vld [vmem:[%s5399_s4 + $0x18] sm:$0xff]  }
 0x17e   :  { %v545_v42 = vpack.c.bf16 %v533_v39, %v532_v38  ;;  %3632 = vmatprep.subr.bf16.mxu1 %v4277_v5  ;;  %v4098_v38 = vld [vmem:[%s5399_s4 + $0x30] sm:$0xff]   ;;  %v4099_v39 = vld [vmem:[%s5399_s4 + $0x38] sm:$0xff]  }
 0x17f   :  { %v544_v43 = vpack.c.bf16 %v531_v41, %v530_v40  ;;  %v3622_v44 = vpop.f32.mrb[8].mxu0  ;;  %3673 = vmatpush3.bf16.msra.mxu0 %v4094_v25  ;;  %v4105_v40 = vld [vmem:[%s5361_s12 + $0x10] sm:$0xff]   ;;  %v4107_v41 = vld [vmem:[%s5361_s12 + $0x18] sm:$0xff]   ;;  %v3129_v25 = vld [vmem:[%s5364_s15] ss:$0 sm:$0xff] }
 0x180   :  { %v4024_v45 = vadd.f32 %v3622_v44, %v3073_v10  ;;  %v495_v46 = vpop.f32.mrb[9].mxu0  ;;  %3674 = vmatprep.subr.bf16.mxu0 %v4277_v5  ;;  %v4113_v44 = vld [vmem:[%s5361_s12 + $0x30] sm:$0xff]  }
 0x181   :  { %v4025_v47 = vadd.f32 %v3073_v10, %v495_v46  ;;  %v3623_v48 = vpop.f32.mrb[10].mxu0  ;;  %3633 = vmatpush3.bf16.msra.mxu1 %v544_v43  ;;  %v4111_v43 = vld [vmem:[%s5361_s12 + $0x28] sm:$0xff]   ;;  %v3100_v46 = vld [vmem:[%s5400_s9] ss:$0 sm:$0xff] }
 0x182   :  { %v4026_v49 = vadd.f32 %v3623_v48, %v3073_v10  ;;  %v498_v50 = vpop.f32.mrb[11].mxu0  ;;  %3634 = vmatprep.subr.bf16.mxu1 %v4277_v5  ;;  %v536_v52 = vmax.f32 %v4024_v45, 0.0  ;;  %v4115_v45 = vld [vmem:[%s5361_s12 + $0x38] sm:$0xff]  }
 0x183   :  { %v4027_v51 = vadd.f32 %v3073_v10, %v498_v50  ;;  %v534_v54 = vmax.f32 %v4025_v47, 0.0  ;;  %3675 = vmatpush3.bf16.msra.mxu0 %v4095_v26 }
 0x184   :  { %v537_v53 = vmax.f32 %v4026_v49, 0.0  ;;  %3676 = vmatprep.subr.bf16.mxu0 %v4277_v5 }
 0x185   :  { %v535_v55 = vmax.f32 %v4027_v51, 0.0  ;;  %3635 = vmatpush3.bf16.msra.mxu1 %v545_v42  ;;  %v4109_v42 = vld [vmem:[%s5361_s12 + $0x20] sm:$0xff]  }
 0x186   :  { %v547_v56 = vpack.c.bf16 %v537_v53, %v536_v52  ;;  %3636 = vmatprep.subr.bf16.mxu1 %v4277_v5 }
 0x187   :  { %v546_v57 = vpack.c.bf16 %v535_v55, %v534_v54  ;;  %v3626_v58 = vpop.f32.mrb[12].mxu0  ;;  %3677 = vmatpush3.bf16.msra.mxu0 %v4096_v27  ;;  %v4100_v55 = vld [vmem:[%s5363_s14] sm:$0xff]  }
 0x188   :  { %v4028_v59 = vadd.f32 %v3626_v58, %v3073_v10  ;;  %v511_v60 = vpop.f32.mrb[13].mxu0  ;;  %3678 = vmatprep.subr.bf16.mxu0 %v4277_v5  ;;  %v4104_v58 = vld [vmem:[%s5363_s14 + $0x10] sm:$0xff]  }
 0x189   :  { %v4029_v61 = vadd.f32 %v3073_v10, %v511_v60  ;;  %v3627_v62 = vpop.f32.mrb[14].mxu0  ;;  %3637 = vmatpush3.bf16.msra.mxu1 %v546_v57  ;;  %v4102_v57 = vld [vmem:[%s5363_s14 + $0x8] sm:$0xff]   ;;  %v4108_v60 = vld [vmem:[%s5363_s14 + $0x20] sm:$0xff]  }
 0x18a   :  { %v4030_v63 = vadd.f32 %v3627_v62, %v3073_v10  ;;  %v514_v0 = vpop.f32.mrb[15].mxu0  ;;  %3638 = vmatprep.subr.bf16.mxu1 %v4277_v5  ;;  %v540_v3 = vmax.f32 %v4028_v59, 0.0  ;;  %v4106_v59 = vld [vmem:[%s5363_s14 + $0x18] sm:$0xff]   ;;  %v4112_v62 = vld [vmem:[%s5363_s14 + $0x30] sm:$0xff]  }
 0x18b   :  { %v4031_v2 = vadd.f32 %v3073_v10, %v514_v0  ;;  %v538_v6 = vmax.f32 %v4029_v61, 0.0  ;;  %v4279_v10 = vmov 1.0|1.0   ;;  %3679 = vmatpush3.bf16.msra.mxu0 %v4097_v28  ;;  %v4110_v61 = vld [vmem:[%s5363_s14 + $0x28] sm:$0xff]  }
 0x18c   :  { %v541_v4 = vmax.f32 %v4030_v63, 0.0  ;;  %3680 = vmatprep.subr.bf16.mxu0 %v4277_v5  ;;  %v4114_v63 = vld [vmem:[%s5363_s14 + $0x38] sm:$0xff]  }
 0x18d   :  { %v539_v7 = vmax.f32 %v4031_v2, 0.0  ;;  %3639 = vmatpush3.bf16.msra.mxu1 %v547_v56 }
 0x18e   :  { %v549_v8 = vpack.c.bf16 %v541_v4, %v540_v3  ;;  %3640 = vmatprep.subr.bf16.mxu1 %v4277_v5 }
 0x18f   :  { %v548_v11 = vpack.c.bf16 %v539_v7, %v538_v6  ;;  %3681 = vmatpush3.bf16.msra.mxu0 %v4098_v38  ;;  %v4118_v38 = vld [vmem:[%s5365_s16 + $0x10] sm:$0xff]  }
 0x190   :  { %3682 = vmatprep.subr.bf16.mxu0 %v4277_v5 }
 0x191   :  { %3641 = vmatpush3.bf16.msra.mxu1 %v548_v11 }
 0x192   :  { %3642 = vmatprep.subr.bf16.mxu1 %v4277_v5 }
 0x193   :  { %3683 = vmatpush3.bf16.msra.mxu0 %v4099_v39  ;;  %v4119_v39 = vld [vmem:[%s5365_s16 + $0x18] sm:$0xff]  }
 0x194   :  { %3708 = vmatprep.subr.bf16.mxu0 %v4277_v5 }
 0x195   :  { %3643 = vmatpush3.bf16.msra.mxu1 %v549_v8 }
 0x196   :  { %3648 = vmatprep.subr.bf16.mxu1 %v4277_v5 }
 0x198   :  { %3645 = vmatmul.mubr.msk.bf16.vlgmr.msra.gmra.mrb[0].mxu1 %vm3098_vm8, %v4279_v10  ;;  %v4129_v10 = vld [vmem:[%s5361_s12 + $0x50] sm:$0xff]  }
 0x199   :  { %3649 = vmatpush3.bf16.msra.mxu1 %v4084_v31  ;;  %3664 = vmatprep.mubr.msk.bf16.mxu1 %vm4278_vm4, %v4277_v5  ;;  %v4127_v31 = vld [vmem:[%s5361_s12 + $0x48] sm:$0xff]  }
 0x19a   :  { %3650 = vmatprep.subr.bf16.mxu1 %v4277_v5 }
 0x19d   :  { %3651 = vmatpush3.bf16.msra.mxu1 %v4085_v16  ;;  %v4131_v16 = vld [vmem:[%s5361_s12 + $0x58] sm:$0xff]  }
 0x19e   :  { %3652 = vmatprep.subr.bf16.mxu1 %v4277_v5 }
 0x1a1   :  { %3653 = vmatpush3.bf16.msra.mxu1 %v4086_v17  ;;  %v4133_v17 = vld [vmem:[%s5361_s12 + $0x60] sm:$0xff]  }
 0x1a2   :  { %3654 = vmatprep.subr.bf16.mxu1 %v4277_v5 }
 0x1a5   :  { %3655 = vmatpush3.bf16.msra.mxu1 %v4087_v18  ;;  %v4135_v18 = vld [vmem:[%s5361_s12 + $0x68] sm:$0xff]  }
 0x1a6   :  { %3656 = vmatprep.subr.bf16.mxu1 %v4277_v5 }
 0x1a9   :  { %3657 = vmatpush3.bf16.msra.mxu1 %v4088_v19  ;;  %v4137_v19 = vld [vmem:[%s5361_s12 + $0x70] sm:$0xff]  }
 0x1aa   :  { %3658 = vmatprep.subr.bf16.mxu1 %v4277_v5 }
 0x1ad   :  { %3659 = vmatpush3.bf16.msra.mxu1 %v4089_v20  ;;  %v4139_v20 = vld [vmem:[%s5361_s12 + $0x78] sm:$0xff]  }
 0x1ae   :  { %3660 = vmatprep.subr.bf16.mxu1 %v4277_v5 }
 0x1b1   :  { %3661 = vmatpush3.bf16.msra.mxu1 %v4090_v21 }
 0x1b2   :  { %3662 = vmatprep.subr.bf16.mxu1 %v4277_v5 }
 0x1b5   :  { %3663 = vmatpush3.bf16.msra.mxu1 %v4091_v22 }
 0x1b6   :  { %3688 = vmatprep.subr.bf16.mxu1 %v4277_v5 }
 0x26b   :  { %v584_v29 = vpop.f32.mrb[0].mxu1 }
 0x26c   :  { %v3646_v30 = vpop.f32.mrb[1].mxu1  ;;  %v591_v34 = vadd.f32 %v584_v29, %v4449_v12  ;;  %v4101_v12 = vld [vmem:[%s5361_s12] sm:$0xff]  }
 0x26d   :  { %v587_v33 = vpop.f32.mrb[2].mxu1 }
 0x26e   :  { %v592_v35 = vadd.f32 %v587_v33, %v4455_v13  ;;  %v3647_v36 = vpop.f32.mrb[3].mxu1  ;;  %v4103_v13 = vld [vmem:[%s5361_s12 + $0x8] sm:$0xff]  }
 0x26f   :  { %v4116_v36 = vld [vmem:[%s5365_s16] sm:$0xff]  }
 0x270   :  { %v609_v37 = vpack.c.bf16 %v592_v35, %v591_v34 }
 0x272   :  { %3665 = vmatmul.mubr.bf16.vlgmr.msra.gmra.mrb[4].mxu1 %v609_v37  ;;  %v4117_v37 = vld [vmem:[%s5365_s16 + $0x8] sm:$0xff]  }
 0x273   :  { %3704 = vmatprep.mubr.msk.bf16.mxu1 %vm4278_vm4, %v4277_v5  ;;  %3689 = vmatpush3.bf16.msra.mxu1 %v4101_v12  ;;  %v4120_v12 = vld [vmem:[%s5365_s16 + $0x20] sm:$0xff]  }
 0x274   :  { %3690 = vmatprep.subr.bf16.mxu1 %v4277_v5 }
 0x277   :  { %3691 = vmatpush3.bf16.msra.mxu1 %v4103_v13  ;;  %v4121_v13 = vld [vmem:[%s5365_s16 + $0x28] sm:$0xff]  }
 0x278   :  { %3692 = vmatprep.subr.bf16.mxu1 %v4277_v5 }
 0x27b   :  { %3693 = vmatpush3.bf16.msra.mxu1 %v4105_v40  ;;  %v4122_v40 = vld [vmem:[%s5365_s16 + $0x30] sm:$0xff]  }
 0x27c   :  { %3694 = vmatprep.subr.bf16.mxu1 %v4277_v5 }
 0x27f   :  { %3695 = vmatpush3.bf16.msra.mxu1 %v4107_v41  ;;  %v4123_v41 = vld [vmem:[%s5365_s16 + $0x38] sm:$0xff]  }
 0x280   :  { %3696 = vmatprep.subr.bf16.mxu1 %v4277_v5 }
 0x283   :  { %3697 = vmatpush3.bf16.msra.mxu1 %v4109_v42  ;;  %v4124_v42 = vld [vmem:[%s5363_s14 + $0x40] sm:$0xff]  }
 0x284   :  { %3698 = vmatprep.subr.bf16.mxu1 %v4277_v5 }
 0x287   :  { %3699 = vmatpush3.bf16.msra.mxu1 %v4111_v43  ;;  %v4126_v43 = vld [vmem:[%s5363_s14 + $0x48] sm:$0xff]  }
 0x288   :  { %3700 = vmatprep.subr.bf16.mxu1 %v4277_v5 }
 0x28b   :  { %3701 = vmatpush3.bf16.msra.mxu1 %v4113_v44  ;;  %v4128_v44 = vld [vmem:[%s5363_s14 + $0x50] sm:$0xff]  }
 0x28c   :  { %3702 = vmatprep.subr.bf16.mxu1 %v4277_v5 }
 0x28f   :  { %3703 = vmatpush3.bf16.msra.mxu1 %v4115_v45  ;;  %v4130_v45 = vld [vmem:[%s5363_s14 + $0x58] sm:$0xff]  }
 0x290   :  { %3754 = vmatprep.subr.bf16.mxu1 %v4277_v5 }
 0x292   :  { %3705 = vmatmul.mubr.bf16.vlgmr.msra.gmra.mrb[8].mxu1 %v4459_v14 }
 0x293   :  { %3770 = vmatprep.mubr.msk.bf16.mxu1 %vm4278_vm4, %v4277_v5  ;;  %3755 = vmatpush3.bf16.msra.mxu1 %v4125_v15 }
 0x294   :  { %3756 = vmatprep.subr.bf16.mxu1 %v4277_v5 }
 0x297   :  { %3757 = vmatpush3.bf16.msra.mxu1 %v4127_v31 }
 0x298   :  { %3758 = vmatprep.subr.bf16.mxu1 %v4277_v5 }
 0x29b   :  { %3759 = vmatpush3.bf16.msra.mxu1 %v4129_v10 }
 0x29c   :  { %3760 = vmatprep.subr.bf16.mxu1 %v4277_v5 }
 0x29f   :  { %3761 = vmatpush3.bf16.msra.mxu1 %v4131_v16 }
 0x2a0   :  { %3762 = vmatprep.subr.bf16.mxu1 %v4277_v5 }
 0x2a3   :  { %3763 = vmatpush3.bf16.msra.mxu1 %v4133_v17  ;;  %v4140_v17 = vld [vmem:[%s5365_s16 + $0x40] sm:$0xff]  }
 0x2a4   :  { %3764 = vmatprep.subr.bf16.mxu1 %v4277_v5 }
 0x2a7   :  { %3765 = vmatpush3.bf16.msra.mxu1 %v4135_v18  ;;  %v4141_v18 = vld [vmem:[%s5365_s16 + $0x48] sm:$0xff]  }
 0x2a8   :  { %3766 = vmatprep.subr.bf16.mxu1 %v4277_v5 }
 0x2ab   :  { %3767 = vmatpush3.bf16.msra.mxu1 %v4137_v19  ;;  %v4142_v19 = vld [vmem:[%s5365_s16 + $0x50] sm:$0xff]  }
 0x2ac   :  { %3768 = vmatprep.subr.bf16.mxu1 %v4277_v5 }
 0x2af   :  { %3769 = vmatpush3.bf16.msra.mxu1 %v4139_v20  ;;  %v4143_v20 = vld [vmem:[%s5365_s16 + $0x58] sm:$0xff]  }
 0x2b0   :  { %3794 = vmatprep.subr.bf16.mxu1 %v4277_v5 }
 0x2b2   :  { %3771 = vmatmul.mubr.bf16.vlgmr.msra.gmra.mrb[12].mxu1 %v4459_v14 }
 0x2b3   :  { %3796 = vmatprep.mubr.msk.bf16.mxu1 %vm4278_vm4, %v4277_v5 }
 0x345   :  { %v699_v47 = vpop.f32.mrb[4].mxu1 }
 0x346   :  { %v700_v48 = vadd.f32 %v3100_v46, %v699_v47  ;;  %v3666_v49 = vpop.f32.mrb[5].mxu1  ;;  %v4134_v47 = vld [vmem:[%s5363_s14 + $0x68] sm:$0xff]  }
 0x347   :  { %v702_v50 = vpop.f32.mrb[6].mxu1  ;;  %v4138_v49 = vld [vmem:[%s5363_s14 + $0x78] sm:$0xff]  }
 0x348   :  { %v703_v51 = vadd.f32 %v3100_v46, %v702_v50  ;;  %v3667_v52 = vpop.f32.mrb[7].mxu1  ;;  %v706_v53 = vmax.f32 %v700_v48, 0.0  ;;  %v4132_v46 = vld [vmem:[%s5363_s14 + $0x60] sm:$0xff]   ;;  %v4136_v48 = vld [vmem:[%s5363_s14 + $0x70] sm:$0xff]  }
 0x349   :  { %v3164_v52 = vld [vmem:[%s5362_s13 + $0x1] ss:$0 sm:$0xff] }
 0x34a   :  { %v707_v54 = vmax.f32 %v703_v51, 0.0 }
 0x34c   :  { %v724_v56 = vpack.c.bf16 %v707_v54, %v706_v53 }
 0x34e   :  { %3685 = vmatmul.mubr.bf16.vlgmr.msra.gmra.mrb[16].mxu0 %v724_v56 }
 0x34f   :  { %3709 = vmatpush3.bf16.msra.mxu0 %v4100_v55  ;;  %3724 = vmatprep.mubr.msk.bf16.mxu0 %vm4278_vm4, %v4277_v5 }
 0x350   :  { %3710 = vmatprep.subr.bf16.mxu0 %v4277_v5 }
 0x353   :  { %3711 = vmatpush3.bf16.msra.mxu0 %v4102_v57 }
 0x354   :  { %3712 = vmatprep.subr.bf16.mxu0 %v4277_v5 }
 0x357   :  { %3713 = vmatpush3.bf16.msra.mxu0 %v4104_v58 }
 0x358   :  { %3714 = vmatprep.subr.bf16.mxu0 %v4277_v5 }
 0x35b   :  { %3715 = vmatpush3.bf16.msra.mxu0 %v4106_v59 }
 0x35c   :  { %3716 = vmatprep.subr.bf16.mxu0 %v4277_v5 }
 0x35f   :  { %3717 = vmatpush3.bf16.msra.mxu0 %v4108_v60 }
 0x360   :  { %3718 = vmatprep.subr.bf16.mxu0 %v4277_v5 }
 0x363   :  { %3719 = vmatpush3.bf16.msra.mxu0 %v4110_v61 }
 0x364   :  { %3720 = vmatprep.subr.bf16.mxu0 %v4277_v5 }
 0x365   :  { %v985_v0 = vpop.f32.mrb[8].mxu1 }
 0x366   :  { %v3706_v2 = vpop.f32.mrb[9].mxu1  ;;  %v986_v3 = vadd.f32 %v3120_v1, %v985_v0 }
 0x367   :  { %3721 = vmatpush3.bf16.msra.mxu0 %v4112_v62  ;;  %v988_v4 = vpop.f32.mrb[10].mxu1 }
 0x368   :  { %3722 = vmatprep.subr.bf16.mxu0 %v4277_v5  ;;  %v989_v6 = vadd.f32 %v3120_v1, %v988_v4  ;;  %v3707_v7 = vpop.f32.mrb[11].mxu1  ;;  %v992_v8 = vmul.f32 0.35355338, %v986_v3 }
 0x36a   :  { %v993_v9 = vmul.f32 0.35355338, %v989_v6  ;;  %v3190_v6 = vld [vmem:[%s5364_s15 + $0x1] ss:$0 sm:$0xff] }
 0x36b   :  { %3723 = vmatpush3.bf16.msra.mxu0 %v4114_v63 }
 0x36c   :  { %3728 = vmatprep.subr.bf16.mxu0 %v4277_v5  ;;  %v1106_v11 = vpack.c.bf16 %v993_v9, %v992_v8 }
 0x36e   :  { %3725 = vmatmul.mubr.bf16.vlgmr.msra.gmra.mrb[20].mxu0 %v4459_v14 }
 0x36f   :  { %3730 = vmatprep.mubr.msk.bf16.mxu0 %vm4278_vm4, %v4277_v5 }
 0x385   :  { %v1393_v50 = vpop.f32.mrb[12].mxu1 }
 0x386   :  { %v3772_v51 = vpop.f32.mrb[13].mxu1  ;;  %v1394_v54 = vadd.f32 %v3164_v52, %v1393_v50 }
 0x387   :  { %v1396_v53 = vpop.f32.mrb[14].mxu1 }
 0x388   :  { %v1397_v55 = vadd.f32 %v3164_v52, %v1396_v53  ;;  %v3773_v56 = vpop.f32.mrb[15].mxu1  ;;  %v1400_v57 = vmul.f32 0.35355338, %v1394_v54 }
 0x38a   :  { %v1401_v58 = vmul.f32 0.35355338, %v1397_v55 }
 0x38c   :  { %v1516_v59 = vpack.c.bf16 %v1401_v58, %v1400_v57 }
 0x421   :  { %v4764_v21 = vpop.f32.mrb[16].mxu0 }
 0x422   :  { %v3686_v22 = vpop.f32.mrb[17].mxu0 }
 0x423   :  { %v4766_v23 = vpop.f32.mrb[18].mxu0  ;;  %v4144_v22 = vld [vmem:[%s5365_s16 + $0x60] sm:$0xff]  }
 0x424   :  { %v3687_v24 = vpop.f32.mrb[19].mxu0 }
 0x425   :  { %v4145_v24 = vld [vmem:[%s5365_s16 + $0x68] sm:$0xff]  }
 0x441   :  { %v1099_v26 = vpop.f32.mrb[20].mxu0 }
 0x442   :  { %v3726_v27 = vpop.f32.mrb[21].mxu0  ;;  %v1100_v29 = vadd.f32 %v3129_v25, %v1099_v26  ;;  %v4147_v26 = vld [vmem:[%s5365_s16 + $0x78] sm:$0xff]  }
 0x443   :  { %v1102_v28 = vpop.f32.mrb[22].mxu0 }
 0x444   :  { %v1103_v30 = vadd.f32 %v3129_v25, %v1102_v28  ;;  %v3727_v33 = vpop.f32.mrb[23].mxu0  ;;  %v4146_v25 = vld [vmem:[%s5365_s16 + $0x70] sm:$0xff]  }
 0x446   :  { %v1107_v34 = vpack.c.bf16 %v1103_v30, %v1100_v29 }
 0x448   :  { %v1112_v35 = vsel %vm278_vm1, %v1107_v34, 0 }
 0x449   :  { %3729 = vmatpush3.bf16.xpose.msra.mxu0 %v1112_v35 }
 0x44a   :  { %3734 = vmatprep.subr.bf16.mxu0 %v4277_v5 }
 0x450   :  { %3731 = vmatmul.mubr.msk.bf16.vlgmr.msra.gmra.mrb[24].mxu0 %vm278_vm1, %v1106_v11 }
 0x451   :  { %3735 = vmatpush3.bf16.msra.mxu0 %v4116_v36  ;;  %3750 = vmatprep.mubr.msk.bf16.mxu0 %vm4278_vm4, %v4277_v5 }
 0x452   :  { %3736 = vmatprep.subr.bf16.mxu0 %v4277_v5 }
 0x455   :  { %3737 = vmatpush3.bf16.msra.mxu0 %v4117_v37 }
 0x456   :  { %3738 = vmatprep.subr.bf16.mxu0 %v4277_v5 }
 0x459   :  { %3739 = vmatpush3.bf16.msra.mxu0 %v4118_v38 }
 0x45a   :  { %3740 = vmatprep.subr.bf16.mxu0 %v4277_v5 }
 0x45d   :  { %3741 = vmatpush3.bf16.msra.mxu0 %v4119_v39 }
 0x45e   :  { %3742 = vmatprep.subr.bf16.mxu0 %v4277_v5 }
 0x461   :  { %3743 = vmatpush3.bf16.msra.mxu0 %v4120_v12 }
 0x462   :  { %3744 = vmatprep.subr.bf16.mxu0 %v4277_v5 }
 0x465   :  { %3745 = vmatpush3.bf16.msra.mxu0 %v4121_v13 }
 0x466   :  { %3746 = vmatprep.subr.bf16.mxu0 %v4277_v5 }
 0x469   :  { %3747 = vmatpush3.bf16.msra.mxu0 %v4122_v40 }
 0x46a   :  { %3748 = vmatprep.subr.bf16.mxu0 %v4277_v5 }
 0x46d   :  { %3749 = vmatpush3.bf16.msra.mxu0 %v4123_v41 }
 0x46e   :  { %3774 = vmatprep.subr.bf16.mxu0 %v4277_v5 }
 0x470   :  { %3751 = vmatmul.mubr.bf16.vlgmr.msra.gmra.mrb[28].mxu0 %v4459_v14 }
 0x471   :  { %3775 = vmatpush3.bf16.msra.mxu0 %v4124_v42  ;;  %3790 = vmatprep.mubr.msk.bf16.mxu0 %vm4278_vm4, %v4277_v5 }
 0x472   :  { %3776 = vmatprep.subr.bf16.mxu0 %v4277_v5 }
 0x475   :  { %3777 = vmatpush3.bf16.msra.mxu0 %v4126_v43 }
 0x476   :  { %3778 = vmatprep.subr.bf16.mxu0 %v4277_v5 }
 0x479   :  { %3779 = vmatpush3.bf16.msra.mxu0 %v4128_v44 }
 0x47a   :  { %3780 = vmatprep.subr.bf16.mxu0 %v4277_v5 }
 0x47d   :  { %3781 = vmatpush3.bf16.msra.mxu0 %v4130_v45 }
 0x47e   :  { %3782 = vmatprep.subr.bf16.mxu0 %v4277_v5 }
 0x481   :  { %3783 = vmatpush3.bf16.msra.mxu0 %v4132_v46 }
 0x482   :  { %3784 = vmatprep.subr.bf16.mxu0 %v4277_v5 }
 0x485   :  { %3785 = vmatpush3.bf16.msra.mxu0 %v4134_v47 }
 0x486   :  { %3786 = vmatprep.subr.bf16.mxu0 %v4277_v5 }
 0x489   :  { %3787 = vmatpush3.bf16.msra.mxu0 %v4136_v48 }
 0x48a   :  { %3788 = vmatprep.subr.bf16.mxu0 %v4277_v5 }
 0x48d   :  { %3789 = vmatpush3.bf16.msra.mxu0 %v4138_v49 }
 0x48e   :  { %3820 = vmatprep.subr.bf16.mxu0 %v4277_v5 }
 0x490   :  { %3791 = vmatmul.mubr.bf16.vlgmr.msra.gmra.mrb[32].mxu0 %v4459_v14 }
 0x491   :  { %3822 = vmatprep.mubr.msk.bf16.mxu0 %vm4278_vm4, %v4277_v5 }
 0x523   :  { %v1148_v60 = vpop.f32.mrb[24].mxu0 }
 0x524   :  { %v3732_v61 = vpop.f32.mrb[25].mxu0  ;;  %v1155_v34 = vsel %vm879_vm9, %v1148_v60, -1e+30 }
 0x525   :  { %v1151_v62 = vpop.f32.mrb[26].mxu0  ;;  %v1157_v38 = vsel %vm404_vm6, %v1155_v34, -inf }
 0x526   :  { %v3733_v63 = vpop.f32.mrb[27].mxu0  ;;  %v1156_v39 = vsel %vm879_vm9, %v1151_v62, -1e+30 }
 0x527   :  { %v1160_v12 = vsel %vm404_vm6, %v1156_v39, -inf }
 0x543   :  { %v4849_v0 = vpop.f32.mrb[28].mxu0 }
 0x544   :  { %v3752_v1 = vpop.f32.mrb[29].mxu0 }
 0x545   :  { %v4851_v2 = vpop.f32.mrb[30].mxu0  ;;  %v4149_v1 = vld [vmem:[%s5361_s12 + $0x80] sm:$0xff]  }
 0x546   :  { %v1285_v3 = vpack.c.bf16 %v4851_v2, %v4849_v0  ;;  %v3753_v4 = vpop.f32.mrb[31].mxu0  ;;  %v4150_v0 = vld [vmem:[%s5363_s14 + $0x88] sm:$0xff]   ;;  %v4152_v2 = vld [vmem:[%s5363_s14 + $0x90] sm:$0xff]  }
 0x547   :  { %v4151_v4 = vld [vmem:[%s5361_s12 + $0x88] sm:$0xff]  }
 0x563   :  { %v1509_v7 = vpop.f32.mrb[32].mxu0 }
 0x564   :  { %v3792_v8 = vpop.f32.mrb[33].mxu0  ;;  %v1510_v11 = vadd.f32 %v3190_v6, %v1509_v7  ;;  %v4155_v7 = vld [vmem:[%s5361_s12 + $0x98] sm:$0xff]  }
 0x565   :  { %v1512_v9 = vpop.f32.mrb[34].mxu0  ;;  %v4157_v8 = vld [vmem:[%s5361_s12 + $0xa0] sm:$0xff]  }
 0x566   :  { %v1513_v15 = vadd.f32 %v3190_v6, %v1512_v9  ;;  %v3793_v31 = vpop.f32.mrb[35].mxu0  ;;  %v4153_v6 = vld [vmem:[%s5361_s12 + $0x90] sm:$0xff]   ;;  %v4159_v9 = vld [vmem:[%s5361_s12 + $0xa8] sm:$0xff]  }
 0x568   :  { %v1517_v10 = vpack.c.bf16 %v1513_v15, %v1510_v11  ;;  %v4161_v11 = vld [vmem:[%s5361_s12 + $0xb0] sm:$0xff]   ;;  %v4163_v15 = vld [vmem:[%s5361_s12 + $0xb8] sm:$0xff]  }
 0x56a   :  { %v1522_v16 = vsel %vm278_vm1, %v1517_v10, 0 }
 0x56b   :  { %3795 = vmatpush3.bf16.xpose.msra.mxu1 %v1522_v16 }
 0x56c   :  { %3800 = vmatprep.subr.bf16.mxu1 %v4277_v5 }
 0x572   :  { %3797 = vmatmul.mubr.msk.bf16.vlgmr.msra.gmra.mrb[16].mxu1 %vm278_vm1, %v1516_v59 }
 0x573   :  { %3816 = vmatprep.mubr.msk.bf16.mxu1 %vm4278_vm4, %v4277_v5  ;;  %3801 = vmatpush3.bf16.msra.mxu1 %v4140_v17 }
 0x574   :  { %3802 = vmatprep.subr.bf16.mxu1 %v4277_v5 }
 0x577   :  { %3803 = vmatpush3.bf16.msra.mxu1 %v4141_v18 }
 0x578   :  { %3804 = vmatprep.subr.bf16.mxu1 %v4277_v5 }
 0x57b   :  { %3805 = vmatpush3.bf16.msra.mxu1 %v4142_v19 }
 0x57c   :  { %3806 = vmatprep.subr.bf16.mxu1 %v4277_v5 }
 0x57f   :  { %3807 = vmatpush3.bf16.msra.mxu1 %v4143_v20 }
 0x580   :  { %3808 = vmatprep.subr.bf16.mxu1 %v4277_v5 }
 0x583   :  { %3809 = vmatpush3.bf16.msra.mxu1 %v4144_v22 }
 0x584   :  { %3810 = vmatprep.subr.bf16.mxu1 %v4277_v5 }
 0x587   :  { %3811 = vmatpush3.bf16.msra.mxu1 %v4145_v24 }
 0x588   :  { %3812 = vmatprep.subr.bf16.mxu1 %v4277_v5 }
 0x58b   :  { %3813 = vmatpush3.bf16.msra.mxu1 %v4146_v25 }
 0x58c   :  { %3814 = vmatprep.subr.bf16.mxu1 %v4277_v5 }
 0x58f   :  { %3815 = vmatpush3.bf16.msra.mxu1 %v4147_v26 }
 0x590   :  { %3832 = vmatprep.subr.bf16.mxu1 %v4277_v5 }
 0x592   :  { %3817 = vmatmul.mubr.bf16.vlgmr.msra.gmra.mrb[20].mxu1 %v4459_v14 }
 0x593   :  { %3848 = vmatprep.mubr.msk.bf16.mxu1 %vm4278_vm4, %v4277_v5  ;;  %3833 = vmatpush3.bf16.msra.mxu1 %v4149_v1  ;;  %v4164_v1 = vld [vmem:[%s5365_s16 + $0x80] sm:$0xff]  }
 0x594   :  { %3834 = vmatprep.subr.bf16.mxu1 %v4277_v5 }
 0x597   :  { %3835 = vmatpush3.bf16.msra.mxu1 %v4151_v4  ;;  %v4165_v4 = vld [vmem:[%s5365_s16 + $0x88] sm:$0xff]  }
 0x598   :  { %3836 = vmatprep.subr.bf16.mxu1 %v4277_v5 }
 0x59b   :  { %3837 = vmatpush3.bf16.msra.mxu1 %v4153_v6  ;;  %v4166_v6 = vld [vmem:[%s5365_s16 + $0x90] sm:$0xff]  }
 0x59c   :  { %3838 = vmatprep.subr.bf16.mxu1 %v4277_v5 }
 0x59f   :  { %3839 = vmatpush3.bf16.msra.mxu1 %v4155_v7  ;;  %v4167_v7 = vld [vmem:[%s5365_s16 + $0x98] sm:$0xff]  }
 0x5a0   :  { %3840 = vmatprep.subr.bf16.mxu1 %v4277_v5 }
 0x5a3   :  { %3841 = vmatpush3.bf16.msra.mxu1 %v4157_v8  ;;  %v4168_v8 = vld [vmem:[%s5365_s16 + $0xa0] sm:$0xff]  }
 0x5a4   :  { %3842 = vmatprep.subr.bf16.mxu1 %v4277_v5 }
 0x5a7   :  { %3843 = vmatpush3.bf16.msra.mxu1 %v4159_v9  ;;  %v4169_v9 = vld [vmem:[%s5365_s16 + $0xa8] sm:$0xff]  }
 0x5a8   :  { %3844 = vmatprep.subr.bf16.mxu1 %v4277_v5 }
 0x5ab   :  { %3845 = vmatpush3.bf16.msra.mxu1 %v4161_v11  ;;  %v4170_v11 = vld [vmem:[%s5365_s16 + $0xb0] sm:$0xff]  }
 0x5ac   :  { %3846 = vmatprep.subr.bf16.mxu1 %v4277_v5 }
 0x5af   :  { %3847 = vmatpush3.bf16.msra.mxu1 %v4163_v15  ;;  %v4171_v15 = vld [vmem:[%s5365_s16 + $0xb8] sm:$0xff]  }
 0x5b0   :  { %3872 = vmatprep.subr.bf16.mxu1 %v4277_v5 }
 0x5b2   :  { %3849 = vmatmul.mubr.bf16.vlgmr.msra.gmra.mrb[24].mxu1 %v4459_v14 }
 0x5b3   :  { %3874 = vmatprep.mubr.msk.bf16.mxu1 %vm4278_vm4, %v4277_v5 }
 0x645   :  { %v1558_v27 = vpop.f32.mrb[16].mxu1 }
 0x646   :  { %v1565_v28 = vsel %vm879_vm9, %v1558_v27, -1e+30  ;;  %v3798_v29 = vpop.f32.mrb[17].mxu1 }
 0x647   :  { %v1561_v30 = vpop.f32.mrb[18].mxu1  ;;  %v1567_v33 = vsel %vm404_vm6, %v1565_v28, -inf  ;;  %v4148_v29 = vld [vmem:[%s5363_s14 + $0x80] sm:$0xff]  }
 0x648   :  { %v1566_v35 = vsel %vm879_vm9, %v1561_v30, -1e+30  ;;  %1568 = vmax.xlane.f32.xlu0 %v1567_v33  ;;  %v3799_v36 = vpop.f32.mrb[19].mxu1  ;;  %v4156_v33 = vld [vmem:[%s5363_s14 + $0xa0] sm:$0xff]  }
 0x649   :  { %v1570_v37 = vsel %vm404_vm6, %v1566_v35, -inf  ;;  %v4162_v36 = vld [vmem:[%s5363_s14 + $0xb8] sm:$0xff]  }
 0x64a   :  { %1571 = vmax.xlane.f32.xlu1 %v1570_v37 }
 0x64c   :  { %1158 = vmax.xlane.f32.xlu0 %v1157_v38 }
 0x650   :  { %1161 = vmax.xlane.f32.xlu0 %v1160_v12 }
 0x665   :  { %v1688_v59 = vpop.f32.mrb[20].mxu1 }
 0x666   :  { %v3818_v60 = vpop.f32.mrb[21].mxu1 }
 0x667   :  { %v1691_v61 = vpop.f32.mrb[22].mxu1 }
 0x668   :  { %v3819_v62 = vpop.f32.mrb[23].mxu1  ;;  %v1696_v63 = vpack.c.bf16 %v1691_v61, %v1688_v59 }
 0x66a   :  { %3821 = vmatpush3.bf16.msra.mxu0 %v1696_v63 }
 0x66b   :  { %3826 = vmatprep.subr.bf16.mxu0 %v4277_v5 }
 0x685   :  { %v1892_v37 = vpop.f32.mrb[24].mxu1 }
 0x686   :  { %v3850_v38 = vpop.f32.mrb[25].mxu1 }
 0x687   :  { %v1895_v12 = vpop.f32.mrb[26].mxu1 }
 0x6d5   :  { %v1569_v13 = vpop.xlane.xlu0 %1568 }
 0x6d6   :  { %v1573_v40 = vsub.f32 %v1565_v28, %v1569_v13 }
 0x6d7   :  { %v1572_v41 = vpop.xlane.xlu1 %1571 }
 0x6d8   :  { %v1575_v42 = vmul.f32 1.442695, %v1573_v40  ;;  %v1574_v43 = vsub.f32 %v1566_v35, %v1572_v41  ;;  %v4160_v35 = vld [vmem:[%s5363_s14 + $0xb0] sm:$0xff]   ;;  %v3851_v41 = vpop.f32.mrb[27].mxu1 }
 0x6d9   :  { %v1159_v44 = vpop.xlane.xlu0 %1158  ;;  %v4180_v41 = vld [vmem:[%s5363_s14 + $0xe8] sm:$0xff]  }
 0x6da   :  { %4212 = vpow2.f32 %v1575_v42  ;;  %v1577_v45 = vmul.f32 1.442695, %v1574_v43  ;;  %v1163_v46 = vsub.f32 %v1155_v34, %v1159_v44  ;;  %v4158_v34 = vld [vmem:[%s5363_s14 + $0xa8] sm:$0xff]  }
 0x6dc   :  { %4214 = vpow2.f32 %v1577_v45  ;;  %v1165_v47 = vmul.f32 1.442695, %v1163_v46 }
 0x6dd   :  { %v1162_v48 = vpop.xlane.xlu0 %1161 }
 0x6de   :  { %4216 = vpow2.f32 %v1165_v47  ;;  %v1164_v49 = vsub.f32 %v1156_v39, %v1162_v48  ;;  %v3243_v39 = vld [vmem:[%s5362_s13 + $0x2] ss:$0 sm:$0xff] }
 0x6df   :  { %v1893_v13 = vadd.f32 %v3243_v39, %v1892_v37  ;;  %v1896_v40 = vadd.f32 %v3243_v39, %v1895_v12  ;;  %v4173_v39 = vld [vmem:[%s5363_s14 + $0xc8] sm:$0xff]   ;;  %v4174_v12 = vld [vmem:[%s5363_s14 + $0xd0] sm:$0xff]  }
 0x6e0   :  { %v1167_v50 = vmul.f32 1.442695, %v1164_v49 }
 0x6e1   :  { %v1899_v42 = vmul.f32 0.35355338, %v1893_v13  ;;  %v1900_v43 = vmul.f32 0.35355338, %v1896_v40  ;;  %v4176_v13 = vld [vmem:[%s5363_s14 + $0xd8] sm:$0xff]   ;;  %v4178_v40 = vld [vmem:[%s5363_s14 + $0xe0] sm:$0xff]  }
 0x6e2   :  { %4218 = vpow2.f32 %v1167_v50 }
 0x6e3   :  { %v2015_v44 = vpack.c.bf16 %v1900_v43, %v1899_v42  ;;  %v4182_v42 = vld [vmem:[%s5363_s14 + $0xf0] sm:$0xff]   ;;  %v4184_v43 = vld [vmem:[%s5363_s14 + $0xf8] sm:$0xff]  }
 0x6e4   :  { %v4213_v51 = vpop.eup %4212 }
 0x6e5   :  { %v1579_v52 = vsel %vm404_vm6, %v4213_v51, 0.0 }
 0x6e6   :  { %v4215_v53 = vpop.eup %4214  ;;  %1580 = vadd.xlane.f32.xlu1 %v1579_v52 }
 0x6e7   :  { %v1582_v54 = vsel %vm404_vm6, %v4215_v53, 0.0 }
 0x6e8   :  { %v4217_v55 = vpop.eup %4216  ;;  %1583 = vadd.xlane.f32.xlu0 %v1582_v54 }
 0x6e9   :  { %v1169_v56 = vsel %vm404_vm6, %v4217_v55, 0.0 }
 0x6ea   :  { %1170 = vadd.xlane.f32.xlu1 %v1169_v56 }
 0x6ec   :  { %v4219_v57 = vpop.eup %4218 }
 0x6ed   :  { %v1172_v58 = vsel %vm404_vm6, %v4219_v57, 0.0 }
 0x6ee   :  { %1173 = vadd.xlane.f32.xlu0 %v1172_v58 }
 0x773   :  { %v1581_v31 = vpop.xlane.xlu1 %1580 }
 0x774   :  { %4220 = vrcp.f32 %v1581_v31 }
 0x775   :  { %v1584_v10 = vpop.xlane.xlu0 %1583 }
 0x776   :  { %4222 = vrcp.f32 %v1584_v10 }
 0x777   :  { %v1171_v16 = vpop.xlane.xlu1 %1170 }
 0x778   :  { %4224 = vrcp.f32 %v1171_v16 }
 0x77b   :  { %v1174_v17 = vpop.xlane.xlu0 %1173 }
 0x77c   :  { %4226 = vrcp.f32 %v1174_v17 }
 0x77e   :  { %v4221_v18 = vpop.eup %4220 }
 0x77f   :  { %v1586_v20 = vmul.f32 %v4221_v18, %v4213_v51 }
 0x780   :  { %v4223_v19 = vpop.eup %4222 }
 0x781   :  { %v1588_v22 = vmul.f32 %v4223_v19, %v4215_v53 }
 0x782   :  { %v4225_v25 = vpop.eup %4224 }
 0x783   :  { %v1695_v24 = vpack.c.bf16 %v1588_v22, %v1586_v20  ;;  %v1176_v28 = vmul.f32 %v4225_v25, %v4217_v55  ;;  %v3269_v55 = vld [vmem:[%s5364_s15 + $0x2] ss:$0 sm:$0xff] }
 0x785   :  { %3823 = vmatmul.mubr.msk.bf16.vlgmr.msra.gmra.mrb[36].mxu0 %vm404_vm6, %v1695_v24 }
 0x786   :  { %v4227_v26 = vpop.eup %4226  ;;  %3827 = vmatpush3.bf16.msra.mxu0 %v1285_v3  ;;  %3828 = vmatprep.mubr.msk.bf16.mxu0 %vm4278_vm4, %v4277_v5  ;;  %v4154_v3 = vld [vmem:[%s5363_s14 + $0x98] sm:$0xff]  }
 0x787   :  { %v1178_v27 = vmul.f32 %v4227_v26, %v4219_v57  ;;  %3852 = vmatprep.subr.bf16.mxu0 %v4277_v5 }
 0x789   :  { %v1284_v30 = vpack.c.bf16 %v1178_v27, %v1176_v28 }
 0x78d   :  { %3829 = vmatmul.mubr.msk.bf16.vlgmr.msra.gmra.mrb[40].mxu0 %vm404_vm6, %v1284_v30 }
 0x78e   :  { %3853 = vmatpush3.bf16.msra.mxu0 %v4148_v29  ;;  %3868 = vmatprep.mubr.msk.bf16.mxu0 %vm4278_vm4, %v4277_v5 }
 0x78f   :  { %3854 = vmatprep.subr.bf16.mxu0 %v4277_v5 }
 0x792   :  { %3855 = vmatpush3.bf16.msra.mxu0 %v4150_v0 }
 0x793   :  { %3856 = vmatprep.subr.bf16.mxu0 %v4277_v5 }
 0x796   :  { %3857 = vmatpush3.bf16.msra.mxu0 %v4152_v2 }
 0x797   :  { %3858 = vmatprep.subr.bf16.mxu0 %v4277_v5 }
 0x79a   :  { %3859 = vmatpush3.bf16.msra.mxu0 %v4154_v3 }
 0x79b   :  { %3860 = vmatprep.subr.bf16.mxu0 %v4277_v5 }
 0x79e   :  { %3861 = vmatpush3.bf16.msra.mxu0 %v4156_v33 }
 0x79f   :  { %3862 = vmatprep.subr.bf16.mxu0 %v4277_v5 }
 0x7a2   :  { %3863 = vmatpush3.bf16.msra.mxu0 %v4158_v34 }
 0x7a3   :  { %3864 = vmatprep.subr.bf16.mxu0 %v4277_v5 }
 0x7a6   :  { %3865 = vmatpush3.bf16.msra.mxu0 %v4160_v35  ;;  %v4172_v35 = vld [vmem:[%s5363_s14 + $0xc0] sm:$0xff]  }
 0x7a7   :  { %3866 = vmatprep.subr.bf16.mxu0 %v4277_v5 }
 0x7aa   :  { %3867 = vmatpush3.bf16.msra.mxu0 %v4162_v36 }
 0x7ab   :  { %3878 = vmatprep.subr.bf16.mxu0 %v4277_v5 }
 0x7ad   :  { %3869 = vmatmul.mubr.bf16.vlgmr.msra.gmra.mrb[44].mxu0 %v4459_v14 }
 0x7ae   :  { %3894 = vmatprep.mubr.msk.bf16.mxu0 %vm4278_vm4, %v4277_v5  ;;  %3879 = vmatpush3.bf16.msra.mxu0 %v4164_v1 }
 0x7af   :  { %3880 = vmatprep.subr.bf16.mxu0 %v4277_v5 }
 0x7b2   :  { %3881 = vmatpush3.bf16.msra.mxu0 %v4165_v4 }
 0x7b3   :  { %3882 = vmatprep.subr.bf16.mxu0 %v4277_v5 }
 0x7b6   :  { %3883 = vmatpush3.bf16.msra.mxu0 %v4166_v6 }
 0x7b7   :  { %3884 = vmatprep.subr.bf16.mxu0 %v4277_v5 }
 0x7ba   :  { %3885 = vmatpush3.bf16.msra.mxu0 %v4167_v7 }
 0x7bb   :  { %3886 = vmatprep.subr.bf16.mxu0 %v4277_v5 }
 0x7be   :  { %3887 = vmatpush3.bf16.msra.mxu0 %v4168_v8 }
 0x7bf   :  { %3888 = vmatprep.subr.bf16.mxu0 %v4277_v5 }
 0x7c2   :  { %3889 = vmatpush3.bf16.msra.mxu0 %v4169_v9 }
 0x7c3   :  { %3890 = vmatprep.subr.bf16.mxu0 %v4277_v5 }
 0x7c6   :  { %3891 = vmatpush3.bf16.msra.mxu0 %v4170_v11 }
 0x7c7   :  { %3892 = vmatprep.subr.bf16.mxu0 %v4277_v5 }
 0x7ca   :  { %3893 = vmatpush3.bf16.msra.mxu0 %v4171_v15 }
 0x7cb   :  { %3924 = vmatprep.subr.bf16.mxu0 %v4277_v5 }
 0x7cd   :  { %3895 = vmatmul.mubr.bf16.vlgmr.msra.gmra.mrb[48].mxu0 %v4459_v14 }
 0x7ce   :  { %3940 = vmatprep.mubr.msk.bf16.mxu0 %vm4278_vm4, %v4277_v5  ;;  %3925 = vmatpush3.bf16.msra.mxu0 %v4172_v35 }
 0x7cf   :  { %3926 = vmatprep.subr.bf16.mxu0 %v4277_v5 }
 0x7d2   :  { %3927 = vmatpush3.bf16.msra.mxu0 %v4173_v39 }
 0x7d3   :  { %3928 = vmatprep.subr.bf16.mxu0 %v4277_v5 }
 0x7d6   :  { %3929 = vmatpush3.bf16.msra.mxu0 %v4174_v12 }
 0x7d7   :  { %3930 = vmatprep.subr.bf16.mxu0 %v4277_v5 }
 0x7da   :  { %3931 = vmatpush3.bf16.msra.mxu0 %v4176_v13 }
 0x7db   :  { %3932 = vmatprep.subr.bf16.mxu0 %v4277_v5 }
 0x7de   :  { %3933 = vmatpush3.bf16.msra.mxu0 %v4178_v40 }
 0x7df   :  { %3934 = vmatprep.subr.bf16.mxu0 %v4277_v5 }
 0x7e2   :  { %3935 = vmatpush3.bf16.msra.mxu0 %v4180_v41 }
 0x7e3   :  { %3936 = vmatprep.subr.bf16.mxu0 %v4277_v5 }
 0x7e6   :  { %3937 = vmatpush3.bf16.msra.mxu0 %v4182_v42 }
 0x7e7   :  { %3938 = vmatprep.subr.bf16.mxu0 %v4277_v5 }
 0x7ea   :  { %3939 = vmatpush3.bf16.msra.mxu0 %v4184_v43 }
 0x7eb   :  { %3970 = vmatprep.subr.bf16.mxu0 %v4277_v5 }
 0x7ed   :  { %3941 = vmatmul.mubr.bf16.vlgmr.msra.gmra.mrb[52].mxu0 %v4459_v14 }
 0x7ee   :  { %3972 = vmatprep.mubr.msk.bf16.mxu0 %vm4278_vm4, %v4277_v5 }
 0x858   :  { %v1734_v45 = vpop.f32.mrb[36].mxu0 }
 0x859   :  { %v3824_v46 = vpop.f32.mrb[37].mxu0 }
 0x85a   :  { %v1737_v47 = vpop.f32.mrb[38].mxu0 }
 0x85b   :  { %v3825_v48 = vpop.f32.mrb[39].mxu0 }
 0x860   :  { %v1778_v49 = vpop.f32.mrb[40].mxu0 }
 0x861   :  { %v4999_v50 = vadd.f32 %v1778_v49, %v1734_v45  ;;  %v3830_v51 = vpop.f32.mrb[41].mxu0 }
 0x862   :  { %v1781_v52 = vpop.f32.mrb[42].mxu0  ;;  %v4175_v51 = vld [vmem:[%s5361_s12 + $0xc0] sm:$0xff]  }
 0x863   :  { %v5001_v53 = vadd.f32 %v1781_v52, %v1737_v47  ;;  %v3831_v54 = vpop.f32.mrb[43].mxu0 }
 0x864   :  { %v4177_v54 = vld [vmem:[%s5361_s12 + $0xc8] sm:$0xff]  }
 0x880   :  { %v2008_v56 = vpop.f32.mrb[44].mxu0 }
 0x881   :  { %v3870_v57 = vpop.f32.mrb[45].mxu0  ;;  %v2009_v59 = vadd.f32 %v3269_v55, %v2008_v56  ;;  %v4181_v56 = vld [vmem:[%s5361_s12 + $0xd8] sm:$0xff]  }
 0x882   :  { %v2011_v58 = vpop.f32.mrb[46].mxu0  ;;  %v4183_v57 = vld [vmem:[%s5361_s12 + $0xe0] sm:$0xff]  }
 0x883   :  { %v2012_v60 = vadd.f32 %v3269_v55, %v2011_v58  ;;  %v3871_v61 = vpop.f32.mrb[47].mxu0  ;;  %v4179_v55 = vld [vmem:[%s5361_s12 + $0xd0] sm:$0xff]   ;;  %v4185_v58 = vld [vmem:[%s5361_s12 + $0xe8] sm:$0xff]  }
 0x884   :  { %v3347_v61 = vld [vmem:[%s5364_s15 + $0x3] ss:$0 sm:$0xff]  ;;  %s5401_s15 = sld [smem:[#allocation14_spill]] }
 0x885   :  { %v2016_v62 = vpack.c.bf16 %v2012_v60, %v2009_v59  ;;  %v4186_v59 = vld [vmem:[%s5361_s12 + $0xf0] sm:$0xff]   ;;  %v4187_v60 = vld [vmem:[%s5361_s12 + $0xf8] sm:$0xff]  }
 0x887   :  { %v2021_v63 = vsel %vm278_vm1, %v2016_v62, 0 }
 0x888   :  { %3873 = vmatpush3.bf16.xpose.msra.mxu1 %v2021_v63 }
 0x889   :  { %3898 = vmatprep.subr.bf16.mxu1 %v4277_v5 }
 0x88f   :  { %3875 = vmatmul.mubr.msk.bf16.vlgmr.msra.gmra.mrb[28].mxu1 %vm278_vm1, %v2015_v44 }
 0x890   :  { %3900 = vmatprep.mubr.msk.bf16.mxu1 %vm4278_vm4, %v4277_v5 }
 0x8a0   :  { %v2187_v33 = vpop.f32.mrb[48].mxu0 }
 0x8a1   :  { %v3896_v34 = vpop.f32.mrb[49].mxu0 }
 0x8a2   :  { %v2190_v36 = vpop.f32.mrb[50].mxu0  ;;  %v4195_v34 = vld [vmem:[%s5365_s16 + $0xf8] sm:$0xff]  }
 0x8a3   :  { %v3897_v37 = vpop.f32.mrb[51].mxu0  ;;  %v2195_v38 = vpack.c.bf16 %v2190_v36, %v2187_v33  ;;  %v4194_v33 = vld [vmem:[%s5365_s16 + $0xf0] sm:$0xff]  }
 0x8a5   :  { %3899 = vmatpush3.bf16.msra.mxu1 %v2195_v38 }
 0x8a6   :  { %3904 = vmatprep.subr.bf16.mxu1 %v4277_v5 }
 0x8c0   :  { %v2465_v62 = vpop.f32.mrb[52].mxu0 }
 0x8c1   :  { %v2466_v63 = vadd.f32 %v3347_v61, %v2465_v62  ;;  %v3942_v1 = vpop.f32.mrb[53].mxu0 }
 0x8c2   :  { %v2468_v4 = vpop.f32.mrb[54].mxu0 }
 0x8c3   :  { %v2469_v6 = vadd.f32 %v3347_v61, %v2468_v4  ;;  %v3943_v7 = vpop.f32.mrb[55].mxu0 }
 0x8c5   :  { %v2473_v8 = vpack.c.bf16 %v2469_v6, %v2466_v63 }
 0x8c7   :  { %v2478_v9 = vsel %vm278_vm1, %v2473_v8, 0 }
 0x962   :  { %v2057_v31 = vpop.f32.mrb[28].mxu1 }
 0x963   :  { %v2064_v10 = vsel %vm879_vm9, %v2057_v31, -1e+30  ;;  %v3876_v16 = vpop.f32.mrb[29].mxu1 }
 0x964   :  { %v2060_v17 = vpop.f32.mrb[30].mxu1  ;;  %v2066_v18 = vsel %vm404_vm6, %v2064_v10, -inf }
 0x965   :  { %v2065_v19 = vsel %vm879_vm9, %v2060_v17, -1e+30  ;;  %2067 = vmax.xlane.f32.xlu1 %v2066_v18  ;;  %v3877_v20 = vpop.f32.mrb[31].mxu1  ;;  %v3321_v18 = vld [vmem:[%s5362_s13 + $0x3] ss:$0 sm:$0xff] }
 0x966   :  { %v2069_v22 = vsel %vm404_vm6, %v2065_v19, -inf }
 0x967   :  { %2070 = vmax.xlane.f32.xlu0 %v2069_v22 }
 0x9f2   :  { %v2068_v24 = vpop.xlane.xlu1 %2067 }
 0x9f3   :  { %v2072_v25 = vsub.f32 %v2064_v10, %v2068_v24 }
 0x9f4   :  { %v2071_v26 = vpop.xlane.xlu0 %2070 }
 0x9f5   :  { %v2074_v27 = vmul.f32 1.442695, %v2072_v25  ;;  %v2073_v28 = vsub.f32 %v2065_v19, %v2071_v26 }
 0x9f7   :  { %4228 = vpow2.f32 %v2074_v27  ;;  %v2076_v29 = vmul.f32 1.442695, %v2073_v28 }
 0x9f9   :  { %4230 = vpow2.f32 %v2076_v29  ;;  %v4189_v29 = vld [vmem:[%s5365_s16 + $0xc8] sm:$0xff]  }
 0xa01   :  { %v4229_v30 = vpop.eup %4228 }
 0xa02   :  { %v2078_v0 = vsel %vm404_vm6, %v4229_v30, 0.0 }
 0xa03   :  { %v4231_v2 = vpop.eup %4230  ;;  %2079 = vadd.xlane.f32.xlu1 %v2078_v0  ;;  %v4191_v0 = vld [vmem:[%s5365_s16 + $0xd8] sm:$0xff]  }
 0xa04   :  { %v2081_v3 = vsel %vm404_vm6, %v4231_v2, 0.0 }
 0xa05   :  { %2082 = vadd.xlane.f32.xlu0 %v2081_v3  ;;  %v4193_v3 = vld [vmem:[%s5365_s16 + $0xe8] sm:$0xff]  }
 0xa90   :  { %v2080_v44 = vpop.xlane.xlu1 %2079 }
 0xa91   :  { %4232 = vrcp.f32 %v2080_v44 }
 0xa92   :  { %v2083_v45 = vpop.xlane.xlu0 %2082 }
 0xa93   :  { %4234 = vrcp.f32 %v2083_v45 }
 0xa9b   :  { %v4233_v46 = vpop.eup %4232 }
 0xa9c   :  { %v2085_v48 = vmul.f32 %v4233_v46, %v4229_v30  ;;  %v4190_v30 = vld [vmem:[%s5365_s16 + $0xd0] sm:$0xff]   ;;  %v3109_v46 = vld [vmem:[%s5401_s15] ss:$0 sm:$0xff] }
 0xa9d   :  { %v4235_v47 = vpop.eup %4234 }
 0xa9e   :  { %v2087_v49 = vmul.f32 %v4235_v47, %v4231_v2  ;;  %v4192_v2 = vld [vmem:[%s5365_s16 + $0xe0] sm:$0xff]   ;;  %v818_v47 = vadd.f32 %v3109_v46, %v4766_v23 }
 0xaa0   :  { %v2194_v52 = vpack.c.bf16 %v2087_v49, %v2085_v48  ;;  %v815_v48 = vadd.f32 %v3109_v46, %v4764_v21  ;;  %v5194_v49 = vld [vmem:[%s5395_s30 + $0x8] sm:$0xff] }
 0xaa2   :  { %3901 = vmatmul.mubr.msk.bf16.vlgmr.msra.gmra.mrb[32].mxu1 %vm404_vm6, %v2194_v52  ;;  %v5201_v52 = vld [vmem:[%s5395_s30] sm:$0xff] }
 0xaa3   :  { %3905 = vmatpush3.bf16.msra.mxu1 %v4175_v51  ;;  %3920 = vmatprep.mubr.msk.bf16.mxu1 %vm4278_vm4, %v4277_v5  ;;  %v822_v51 = vadd.f32 %v5194_v49, %v818_v47 }
 0xaa4   :  { %3906 = vmatprep.subr.bf16.mxu1 %v4277_v5 }
 0xaa7   :  { %3907 = vmatpush3.bf16.msra.mxu1 %v4177_v54  ;;  %v821_v54 = vadd.f32 %v5201_v52, %v815_v48 }
 0xaa8   :  { %3908 = vmatprep.subr.bf16.mxu1 %v4277_v5 }
 0xaab   :  { %3909 = vmatpush3.bf16.msra.mxu1 %v4179_v55 }
 0xaac   :  { %3910 = vmatprep.subr.bf16.mxu1 %v4277_v5 }
 0xaaf   :  { %3911 = vmatpush3.bf16.msra.mxu1 %v4181_v56 }
 0xab0   :  { %3912 = vmatprep.subr.bf16.mxu1 %v4277_v5 }
 0xab3   :  { %3913 = vmatpush3.bf16.msra.mxu1 %v4183_v57 }
 0xab4   :  { %3914 = vmatprep.subr.bf16.mxu1 %v4277_v5 }
 0xab7   :  { %3915 = vmatpush3.bf16.msra.mxu1 %v4185_v58 }
 0xab8   :  { %3916 = vmatprep.subr.bf16.mxu1 %v4277_v5 }
 0xabb   :  { %3917 = vmatpush3.bf16.msra.mxu1 %v4186_v59 }
 0xabc   :  { %3918 = vmatprep.subr.bf16.mxu1 %v4277_v5 }
 0xabf   :  { %3919 = vmatpush3.bf16.msra.mxu1 %v4187_v60 }
 0xac0   :  { %3944 = vmatprep.subr.bf16.mxu1 %v4277_v5 }
 0xac2   :  { %3921 = vmatmul.mubr.bf16.vlgmr.msra.gmra.mrb[36].mxu1 %v4459_v14 }
 0xac3   :  { %3946 = vmatprep.mubr.msk.bf16.mxu1 %vm4278_vm4, %v4277_v5 }
 0xac8   :  { %3945 = vmatpush3.bf16.xpose.msra.mxu1 %v2478_v9 }
 0xac9   :  { %3950 = vmatprep.subr.bf16.mxu1 %v4277_v5 }
 0xb75   :  { %v2233_v11 = vpop.f32.mrb[32].mxu1 }
 0xb76   :  { %v5134_v15 = vadd.f32 %v2233_v11, %v4999_v50  ;;  %v3902_v31 = vpop.f32.mrb[33].mxu1 }
 0xb77   :  { %v2236_v10 = vpop.f32.mrb[34].mxu1 }
 0xb78   :  { %v5137_v16 = vadd.f32 %v2236_v10, %v5001_v53  ;;  %v3903_v17 = vpop.f32.mrb[35].mxu1  ;;  %v4188_v53 = vld [vmem:[%s5365_s16 + $0xc0] sm:$0xff]  }
 0xb95   :  { %v2349_v19 = vpop.f32.mrb[36].mxu1 }
 0xb96   :  { %v2350_v20 = vadd.f32 %v3321_v18, %v2349_v19  ;;  %v3922_v22 = vpop.f32.mrb[37].mxu1 }
 0xb97   :  { %v2352_v24 = vpop.f32.mrb[38].mxu1 }
 0xb98   :  { %v2353_v25 = vadd.f32 %v3321_v18, %v2352_v24  ;;  %v3923_v26 = vpop.f32.mrb[39].mxu1  ;;  %v2356_v27 = vmul.f32 0.35355338, %v2350_v20 }
 0xb9a   :  { %v2357_v28 = vmul.f32 0.35355338, %v2353_v25 }
 0xb9c   :  { %v2472_v50 = vpack.c.bf16 %v2357_v28, %v2356_v27 }
 0xb9e   :  { %3947 = vmatmul.mubr.msk.bf16.vlgmr.msra.gmra.mrb[40].mxu1 %vm278_vm1, %v2472_v50  ;;  %vm95_vm1 = vcmp.lt.s32.totalorder %v4520_v32, 32 }
 0xb9f   :  { %3966 = vmatprep.mubr.msk.bf16.mxu1 %vm4278_vm4, %v4277_v5  ;;  %3951 = vmatpush3.bf16.msra.mxu1 %v4188_v53  ;;  %v5205_v23 = vsel %vm95_vm1, 1.0, %v4277_v5 }
 0xba0   :  { %3952 = vmatprep.subr.bf16.mxu1 %v4277_v5  ;;  %v826_v55 = vmul.f32 %v822_v51, %v5205_v23  ;;  %v825_v58 = vmul.f32 %v821_v54, %v5205_v23 }
 0xba2   :  { %v827_v59 = vadd.f32 %v826_v55, %v825_v58 }
 0xba3   :  { %3953 = vmatpush3.bf16.msra.mxu1 %v4189_v29 }
 0xba4   :  { %3954 = vmatprep.subr.bf16.mxu1 %v4277_v5 }
 0xba7   :  { %3955 = vmatpush3.bf16.msra.mxu1 %v4190_v30 }
 0xba8   :  { %3956 = vmatprep.subr.bf16.mxu1 %v4277_v5 }
 0xbab   :  { %3957 = vmatpush3.bf16.msra.mxu1 %v4191_v0 }
 0xbac   :  { %3958 = vmatprep.subr.bf16.mxu1 %v4277_v5 }
 0xbaf   :  { %3959 = vmatpush3.bf16.msra.mxu1 %v4192_v2 }
 0xbb0   :  { %3960 = vmatprep.subr.bf16.mxu1 %v4277_v5 }
 0xbb3   :  { %3961 = vmatpush3.bf16.msra.mxu1 %v4193_v3 }
 0xbb4   :  { %3962 = vmatprep.subr.bf16.mxu1 %v4277_v5 }
 0xbb7   :  { %3963 = vmatpush3.bf16.msra.mxu1 %v4194_v33 }
 0xbb8   :  { %3964 = vmatprep.subr.bf16.mxu1 %v4277_v5 }
 0xbbb   :  { %3965 = vmatpush3.bf16.msra.mxu1 %v4195_v34 }
 0xbbc   :  { %3996 = vmatprep.subr.bf16.mxu1 %v4277_v5 }
 0xbbe   :  { %3967 = vmatmul.mubr.bf16.vlgmr.msra.gmra.mrb[44].mxu1 %v4459_v14 }
 0xbbf   :  { %4012 = vmatprep.mubr.msk.bf16.mxu1 %vm4278_vm4, %v4277_v5 }
 0xc71   :  { %v2514_v35 = vpop.f32.mrb[40].mxu1 }
 0xc72   :  { %v2521_v36 = vsel %vm879_vm9, %v2514_v35, -1e+30  ;;  %v3948_v37 = vpop.f32.mrb[41].mxu1 }
 0xc73   :  { %v2517_v38 = vpop.f32.mrb[42].mxu1  ;;  %v2523_v39 = vsel %vm404_vm6, %v2521_v36, -inf  ;;  %v3382_v37 = vld [vmem:[%s5366_s17] ss:$0 sm:$0xff] }
 0xc74   :  { %v2522_v12 = vsel %vm879_vm9, %v2517_v38, -1e+30  ;;  %2524 = vmax.xlane.f32.xlu1 %v2523_v39  ;;  %v3949_v13 = vpop.f32.mrb[43].mxu1 }
 0xc75   :  { %v2526_v40 = vsel %vm404_vm6, %v2522_v12, -inf }
 0xc76   :  { %2527 = vmax.xlane.f32.xlu0 %v2526_v40 }
 0xc91   :  { %v2644_v60 = vpop.f32.mrb[44].mxu1 }
 0xc92   :  { %v3968_v61 = vpop.f32.mrb[45].mxu1 }
 0xc93   :  { %v2647_v62 = vpop.f32.mrb[46].mxu1 }
 0xc94   :  { %v3969_v63 = vpop.f32.mrb[47].mxu1  ;;  %v2652_v1 = vpack.c.bf16 %v2647_v62, %v2644_v60 }
 0xc95   :  { %v4196_v63 = vld [vmem:[%s5369_s20] sm:$0xff]  }
 0xc96   :  { %3971 = vmatpush3.bf16.msra.mxu0 %v2652_v1  ;;  %v4197_v1 = vld [vmem:[%s5369_s20 + $0x8] sm:$0xff]  }
 0xc97   :  { %3976 = vmatprep.subr.bf16.mxu0 %v4277_v5 }
 0xd01   :  { %v2525_v14 = vpop.xlane.xlu1 %2524 }
 0xd02   :  { %v2529_v41 = vsub.f32 %v2521_v36, %v2525_v14 }
 0xd03   :  { %v2528_v42 = vpop.xlane.xlu0 %2527 }
 0xd04   :  { %v2531_v43 = vmul.f32 1.442695, %v2529_v41  ;;  %v2530_v44 = vsub.f32 %v2522_v12, %v2528_v42 }
 0xd06   :  { %4236 = vpow2.f32 %v2531_v43  ;;  %v2533_v45 = vmul.f32 1.442695, %v2530_v44 }
 0xd08   :  { %4238 = vpow2.f32 %v2533_v45 }
 0xd10   :  { %v4237_v21 = vpop.eup %4236 }
 0xd11   :  { %v2535_v56 = vsel %vm404_vm6, %v4237_v21, 0.0 }
 0xd12   :  { %v4239_v57 = vpop.eup %4238  ;;  %2536 = vadd.xlane.f32.xlu1 %v2535_v56 }
 0xd13   :  { %v2538_v32 = vsel %vm404_vm6, %v4239_v57, 0.0 }
 0xd14   :  { %2539 = vadd.xlane.f32.xlu0 %v2538_v32 }
 0xd16   :  { %828 = vadd.xlane.f32.xlu1 %v827_v59 }
 0xd9f   :  { %v2537_v4 = vpop.xlane.xlu1 %2536 }
 0xda0   :  { %4240 = vrcp.f32 %v2537_v4  ;;  %v4198_v4 = vld [vmem:[%s5369_s20 + $0x10] sm:$0xff]  }
 0xda1   :  { %v2540_v6 = vpop.xlane.xlu0 %2539 }
 0xda2   :  { %4242 = vrcp.f32 %v2540_v6  ;;  %v4199_v6 = vld [vmem:[%s5369_s20 + $0x18] sm:$0xff]  }
 0xda3   :  { %v829_v7 = vpop.xlane.xlu1 %828 }
 0xda4   :  { %v830_v8 = vrot.slane %v829_v7, 4 }
 0xda6   :  { %v831_v9 = vadd.f32 %v830_v8, %v829_v7  ;;  %v4200_v7 = vld [vmem:[%s5369_s20 + $0x20] sm:$0xff]   ;;  %v4201_v8 = vld [vmem:[%s5369_s20 + $0x28] sm:$0xff]  }
 0xda8   :  { %v832_v11 = vrot.slane %v831_v9, 2 }
 0xdaa   :  { %v4241_v31 = vpop.eup %4240  ;;  %v833_v10 = vadd.f32 %v832_v11, %v831_v9 }
 0xdab   :  { %v2542_v19 = vmul.f32 %v4241_v31, %v4237_v21 }
 0xdac   :  { %v4243_v17 = vpop.eup %4242  ;;  %v834_v18 = vrot.slane %v833_v10, 1 }
 0xdad   :  { %v2544_v20 = vmul.f32 %v4243_v17, %v4239_v57 }
 0xdae   :  { %v835_v22 = vadd.f32 %v834_v18, %v833_v10  ;;  %v4202_v10 = vld [vmem:[%s5369_s20 + $0x30] sm:$0xff]  }
 0xdaf   :  { %v2651_v24 = vpack.c.bf16 %v2544_v20, %v2542_v19  ;;  %v4203_v19 = vld [vmem:[%s5369_s20 + $0x38] sm:$0xff]  }
 0xdb0   :  { %4049 = vpush %v835_v22 }
 0xdb1   :  { %3973 = vmatmul.mubr.msk.bf16.vlgmr.msra.gmra.mrb[56].mxu0 %vm404_vm6, %v2651_v24  ;;  %v4204_v24 = vld [vmem:[%s5371_s22] sm:$0xff]  }
 0xdb2   :  { %3992 = vmatprep.mubr.msk.bf16.mxu0 %vm4278_vm4, %v4277_v5  ;;  %3977 = vmatpush3.bf16.msra.mxu0 %v4196_v63 }
 0xdb3   :  { %3978 = vmatprep.subr.bf16.mxu0 %v4277_v5  ;;  %3997 = vmatpush3.bf16.msra.mxu1 %v4204_v24 }
 0xdb4   :  { %3998 = vmatprep.subr.bf16.mxu1 %v4277_v5 }
 0xdb6   :  { %3979 = vmatpush3.bf16.msra.mxu0 %v4197_v1 }
 0xdb7   :  { %3980 = vmatprep.subr.bf16.mxu0 %v4277_v5 }
 0xdba   :  { %3981 = vmatpush3.bf16.msra.mxu0 %v4198_v4 }
 0xdbb   :  { %3982 = vmatprep.subr.bf16.mxu0 %v4277_v5 }
 0xdbe   :  { %3983 = vmatpush3.bf16.msra.mxu0 %v4199_v6 }
 0xdbf   :  { %3984 = vmatprep.subr.bf16.mxu0 %v4277_v5 }
 0xdc2   :  { %3985 = vmatpush3.bf16.msra.mxu0 %v4200_v7 }
 0xdc3   :  { %3986 = vmatprep.subr.bf16.mxu0 %v4277_v5 }
 0xdc6   :  { %3987 = vmatpush3.bf16.msra.mxu0 %v4201_v8 }
 0xdc7   :  { %3988 = vmatprep.subr.bf16.mxu0 %v4277_v5 }
 0xdca   :  { %3989 = vmatpush3.bf16.msra.mxu0 %v4202_v10 }
 0xdcb   :  { %3990 = vmatprep.subr.bf16.mxu0 %v4277_v5 }
 0xdce   :  { %3991 = vmatpush3.bf16.msra.mxu0 %v4203_v19 }
 0xde1   :  { %s4050_s30 = spop %4049 }
 0xde2   :  { %s837_s28 = smul.f32 0.001953125, %s4050_s30 }
 0xde4   :  { %v838_v25 = vstv %s837_s28  ;;  %s5402_s28 = sld [smem:[#allocation15_spill]] }
 0xde5   :  { %v5215_v26 = vsub.f32 %v821_v54, %v838_v25  ;;  %v5217_v27 = vsub.f32 %v822_v51, %v838_v25  ;;  %v4205_v25 = vld [vmem:[%s5371_s22 + $0x8] sm:$0xff]  }
 0xde6   :  { %3999 = vmatpush3.bf16.msra.mxu1 %v4205_v25 }
 0xde7   :  { %v841_v28 = vmul.f32 %v5215_v26, %v5205_v23  ;;  %v842_v50 = vmul.f32 %v5217_v27, %v5205_v23  ;;  %4000 = vmatprep.subr.bf16.mxu1 %v4277_v5 }
 0xde9   :  { %v843_v53 = vmul.f32 %v841_v28, %v841_v28  ;;  %v844_v29 = vmul.f32 %v842_v50, %v842_v50  ;;  %v4206_v28 = vld [vmem:[%s5371_s22 + $0x10] sm:$0xff]   ;;  %v4207_v50 = vld [vmem:[%s5371_s22 + $0x18] sm:$0xff]  }
 0xdea   :  { %4001 = vmatpush3.bf16.msra.mxu1 %v4206_v28 }
 0xdeb   :  { %v845_v30 = vadd.f32 %v844_v29, %v843_v53  ;;  %4002 = vmatprep.subr.bf16.mxu1 %v4277_v5  ;;  %v4208_v53 = vld [vmem:[%s5371_s22 + $0x20] sm:$0xff]   ;;  %v4209_v29 = vld [vmem:[%s5371_s22 + $0x28] sm:$0xff]  }
 0xded   :  { %846 = vadd.xlane.f32.xlu0 %v845_v30 }
 0xdee   :  { %4003 = vmatpush3.bf16.msra.mxu1 %v4207_v50 }
 0xdef   :  { %4004 = vmatprep.subr.bf16.mxu1 %v4277_v5 }
 0xdf2   :  { %4005 = vmatpush3.bf16.msra.mxu1 %v4208_v53 }
 0xdf3   :  { %4006 = vmatprep.subr.bf16.mxu1 %v4277_v5 }
 0xdf6   :  { %4007 = vmatpush3.bf16.msra.mxu1 %v4209_v29 }
 0xdf7   :  { %4008 = vmatprep.subr.bf16.mxu1 %v4277_v5 }
 0xe7a   :  { %v847_v0 = vpop.xlane.xlu0 %846 }
 0xe7b   :  { %v848_v2 = vrot.slane %v847_v0, 4 }
 0xe7d   :  { %v849_v3 = vadd.f32 %v848_v2, %v847_v0 }
 0xe7f   :  { %v850_v33 = vrot.slane %v849_v3, 2 }
 0xe81   :  { %v851_v34 = vadd.f32 %v850_v33, %v849_v3 }
 0xe83   :  { %v852_v35 = vrot.slane %v851_v34, 1 }
 0xe84   :  { %v2690_v36 = vpop.f32.mrb[56].mxu0 }
 0xe85   :  { %v2697_v38 = vadd.f32 %v2690_v36, %v5134_v15  ;;  %v3974_v39 = vpop.f32.mrb[57].mxu0  ;;  %v853_v12 = vadd.f32 %v852_v35, %v851_v34  ;;  %v3118_v34 = vld [vmem:[%s5402_s28] ss:$0 sm:$0xff] }
 0xe86   :  { %v2693_v13 = vpop.f32.mrb[58].mxu0  ;;  %v3383_v35 = vld [vmem:[%s5367_s18] ss:$0 sm:$0xff] }
 0xe87   :  { %v2706_v40 = vadd.f32 %v3382_v37, %v2697_v38  ;;  %v2698_v14 = vadd.f32 %v2693_v13, %v5137_v16  ;;  %4051 = vpush %v853_v12  ;;  %v3975_v41 = vpop.f32.mrb[59].mxu0 }
 0xe89   :  { %v2708_v42 = vadd.f32 %v5201_v52, %v2706_v40  ;;  %v2707_v43 = vadd.f32 %v3382_v37, %v2698_v14 }
 0xe8b   :  { %v2709_v44 = vadd.f32 %v5194_v49, %v2707_v43  ;;  %v2712_v45 = vmul.f32 %v2708_v42, %v5205_v23 }
 0xe8d   :  { %v2713_v46 = vmul.f32 %v2709_v44, %v5205_v23 }
 0xe8f   :  { %v2714_v47 = vadd.f32 %v2713_v46, %v2712_v45 }
 0xe91   :  { %2715 = vadd.xlane.f32.xlu1 %v2714_v47  ;;  %v4210_v47 = vld [vmem:[%s5371_s22 + $0x30] sm:$0xff]  }
 0xe92   :  { %4009 = vmatpush3.bf16.msra.mxu1 %v4210_v47 }
 0xe93   :  { %4010 = vmatprep.subr.bf16.mxu1 %v4277_v5  ;;  %v3394_v5 = vld [vmem:[%s5372_s23] ss:$0 sm:$0xff] }
 0xeb8   :  { %s4052_s17 = spop %4051 }
 0xeb9   :  { %s855_s8 = smul.f32 0.001953125, %s4052_s17 }
 0xebb   :  { %s856_s0 = sadd.f32 1e-05, %s855_s8 }
 0xebd   :  { %v857_v15 = vstv %s856_s0 }
 0xebe   :  { %4244 = vrsqrt.f32 %v857_v15  ;;  %v4211_v15 = vld [vmem:[%s5371_s22 + $0x38] sm:$0xff]  }
 0xebf   :  { %4011 = vmatpush3.bf16.msra.mxu1 %v4211_v15 }
 0xec8   :  { %v4245_v48 = vpop.eup %4244 }
 0xec9   :  { %4053 = vpush %v4245_v48  ;;  %v3385_v48 = vld [vmem:[%s5370_s21] ss:$0 sm:$0xff] }
 0xefa   :  { %s5232_s1 = spop %4053 }
 0xefb   :  { %v860_v2 = vstv %s5232_s1 }
 0xefc   :  { %v861_v3 = vmul.f32 %v860_v2, %v5215_v26  ;;  %v862_v33 = vmul.f32 %v860_v2, %v5217_v27  ;;  %v3119_v26 = vld [vmem:[%s5360_s11] ss:$0 sm:$0xff] }
 0xefd   :  { %v3384_v27 = vld [vmem:[%s5368_s19] ss:$0 sm:$0xff] }
 0xefe   :  { %v869_v37 = vmul.f32 %v3118_v34, %v861_v3  ;;  %v870_v38 = vmul.f32 %v3118_v34, %v862_v33 }
 0xf00   :  { %v877_v14 = vadd.f32 %v3119_v26, %v869_v37  ;;  %v878_v41 = vadd.f32 %v3119_v26, %v870_v38 }
 0xf1e   :  { %v2716_v16 = vpop.xlane.xlu1 %2715 }
 0xf1f   :  { %v2717_v51 = vrot.slane %v2716_v16, 4 }
 0xf21   :  { %v2718_v54 = vadd.f32 %v2717_v51, %v2716_v16 }
 0xf23   :  { %v2719_v52 = vrot.slane %v2718_v54, 2 }
 0xf25   :  { %v2720_v21 = vadd.f32 %v2719_v52, %v2718_v54 }
 0xf27   :  { %v2721_v55 = vrot.slane %v2720_v21, 1 }
 0xf29   :  { %v2722_v49 = vadd.f32 %v2721_v55, %v2720_v21 }
 0xf2b   :  { %4055 = vpush %v2722_v49 }
 0xf5c   :  { %s4056_s9 = spop %4055 }
 0xf5d   :  { %s2724_s2 = smul.f32 0.001953125, %s4056_s9 }
 0xf5f   :  { %v2725_v56 = vstv %s2724_s2 }
 0xf60   :  { %v5234_v57 = vsub.f32 %v2708_v42, %v2725_v56  ;;  %v5236_v58 = vsub.f32 %v2709_v44, %v2725_v56 }
 0xf62   :  { %v2728_v32 = vmul.f32 %v5234_v57, %v5205_v23  ;;  %v2729_v59 = vmul.f32 %v5236_v58, %v5205_v23 }
 0xf64   :  { %v2730_v60 = vmul.f32 %v2728_v32, %v2728_v32  ;;  %v2731_v61 = vmul.f32 %v2729_v59, %v2729_v59 }
 0xf66   :  { %v2732_v62 = vadd.f32 %v2731_v61, %v2730_v60 }
 0xf68   :  { %2733 = vadd.xlane.f32.xlu0 %v2732_v62 }
 0xff5   :  { %v2734_v9 = vpop.xlane.xlu0 %2733 }
 0xff6   :  { %v2735_v11 = vrot.slane %v2734_v9, 4 }
 0xff8   :  { %v2736_v31 = vadd.f32 %v2735_v11, %v2734_v9 }
 0xffa   :  { %v2737_v17 = vrot.slane %v2736_v31, 2 }
 0xffc   :  { %v2738_v18 = vadd.f32 %v2737_v17, %v2736_v31 }
 0xffe   :  { %v2739_v20 = vrot.slane %v2738_v18, 1 }
0x1000   :  { %v2740_v22 = vadd.f32 %v2739_v20, %v2738_v18 }
0x1002   :  { %4057 = vpush %v2740_v22 }
0x1033   :  { %s4058_s6 = spop %4057 }
0x1034   :  { %s2742_s27 = smul.f32 0.001953125, %s4058_s6 }
0x1036   :  { %s2743_s13 = sadd.f32 1e-05, %s2742_s27  ;;  %s4280_s27 = smov [#allocation2]  }
0x1038   :  { %v2744_v30 = vstv %s2743_s13  ;;  %s3061_s13 = sshll.u32 %s4280_s27, 4  ;;  %s3062_s13 = int_to_ptr.vmem [resolvable:$true] %s3061_s13 }
0x1039   :  { %4246 = vrsqrt.f32 %v2744_v30  ;;  %s4252_s28 = scalar_lea.vmem %s3062_s13, 256  ;;  %p4257_p1 = scmp.lt.s32.totalorder %s3062_s13, %s3062_s13 }
0x103a   :  { %p4253_p0 = scmp.ne.s32.totalorder %s3062_s13, %s4252_s28  ;;  %p4258_p2 = scmp.lt.s32.totalorder %s4252_s28, %s4252_s28 }
0x103c   :  { %p4259_p3 = por %p4258_p2, %p4257_p1 }
0x103e   :  { %p4260_p4 = pnand %p4259_p3, %p4253_p0 }
0x1043   :  { %v4247_v0 = vpop.eup %4246 }
0x1044   :  { %4059 = vpush %v4247_v0 }
0x1075   :  { %s4060_s29 = spop %4059 }
0x1076   :  { %v2747_v36 = vstv %s4060_s29 }
0x1077   :  { %v2748_v39 = vmul.f32 %v2747_v36, %v5234_v57  ;;  %v2749_v12 = vmul.f32 %v2747_v36, %v5236_v58 }
0x1079   :  { %v2756_v13 = vmul.f32 %v3383_v35, %v2748_v39  ;;  %v2757_v40 = vmul.f32 %v3383_v35, %v2749_v12  ;;  %v3404_v12 = vld [vmem:[%s5374_s25] ss:$0 sm:$0xff] }
0x107b   :  { %v2764_v42 = vadd.f32 %v3384_v27, %v2756_v13  ;;  %v2765_v43 = vadd.f32 %v3384_v27, %v2757_v40 }
0x107d   :  { %v2766_v44 = vadd.f32 %v2764_v42, %v877_v14  ;;  %v2767_v45 = vadd.f32 %v2765_v43, %v878_v41 }
0x107f   :  { %v2784_v46 = vpack.c.bf16 %v2767_v45, %v2766_v44 }
0x1081   :  { %3993 = vmatmul.mubr.bf16.vlgmr.msra.gmra.mrb[60].mxu0 %v2784_v46 }
0x1154   :  { %v2874_v16 = vpop.f32.mrb[60].mxu0 }
0x1155   :  { %v2875_v51 = vadd.f32 %v3385_v48, %v2874_v16  ;;  %v3994_v54 = vpop.f32.mrb[61].mxu0 }
0x1156   :  { %v2877_v52 = vpop.f32.mrb[62].mxu0 }
0x1157   :  { %v2878_v21 = vadd.f32 %v3385_v48, %v2877_v52  ;;  %v3995_v55 = vpop.f32.mrb[63].mxu0  ;;  %v2881_v49 = vmax.f32 %v2875_v51, 0.0 }
0x1159   :  { %v2882_v56 = vmax.f32 %v2878_v21, 0.0 }
0x115b   :  { %v2899_v57 = vpack.c.bf16 %v2882_v56, %v2881_v49 }
0x115d   :  { %4013 = vmatmul.mubr.bf16.vlgmr.msra.gmra.mrb[48].mxu1 %v2899_v57 }
0x1230   :  { %v2989_v58 = vpop.f32.mrb[48].mxu1 }
0x1231   :  { %v2990_v32 = vadd.f32 %v3394_v5, %v2989_v58  ;;  %v4014_v59 = vpop.f32.mrb[49].mxu1 }
0x1232   :  { %v2992_v60 = vpop.f32.mrb[50].mxu1 }
0x1233   :  { %v2996_v61 = vadd.f32 %v2990_v32, %v2766_v44  ;;  %v2993_v62 = vadd.f32 %v3394_v5, %v2992_v60  ;;  %v4015_v63 = vpop.f32.mrb[51].mxu1 }
0x1235   :  { %v2997_v1 = vadd.f32 %v2993_v62, %v2767_v45  ;;  %v3000_v4 = vmul.f32 %v2996_v61, %v5205_v23 }
0x1237   :  { %v3001_v6 = vmul.f32 %v2997_v1, %v5205_v23 }
0x1239   :  { %v3002_v7 = vadd.f32 %v3001_v6, %v3000_v4 }
0x123b   :  { %3003 = vadd.xlane.f32.xlu1 %v3002_v7 }
0x12c8   :  { %v3004_v8 = vpop.xlane.xlu1 %3003 }
0x12c9   :  { %v3005_v9 = vrot.slane %v3004_v8, 4 }
0x12cb   :  { %v3006_v11 = vadd.f32 %v3005_v9, %v3004_v8 }
0x12cd   :  { %v3007_v31 = vrot.slane %v3006_v11, 2 }
0x12cf   :  { %v3008_v10 = vadd.f32 %v3007_v31, %v3006_v11 }
0x12d1   :  { %v3009_v17 = vrot.slane %v3008_v10, 1 }
0x12d3   :  { %v3010_v18 = vadd.f32 %v3009_v17, %v3008_v10 }
0x12d5   :  { %4061 = vpush %v3010_v18 }
0x1306   :  { %s4062_s21 = spop %4061 }
0x1307   :  { %s3012_s22 = smul.f32 0.001953125, %s4062_s21 }
0x1309   :  { %v3013_v19 = vstv %s3012_s22 }
0x130a   :  { %v3014_v20 = vsub.f32 %v2996_v61, %v3013_v19  ;;  %v3015_v22 = vsub.f32 %v2997_v1, %v3013_v19 }
0x130c   :  { %v3016_v24 = vmul.f32 %v3014_v20, %v5205_v23  ;;  %v3017_v25 = vmul.f32 %v3015_v22, %v5205_v23  ;;  %v3403_v23 = vld [vmem:[%s5373_s24] ss:$0 sm:$0xff] }
0x130e   :  { %v3018_v28 = vmul.f32 %v3016_v24, %v3016_v24  ;;  %v3019_v50 = vmul.f32 %v3017_v25, %v3017_v25 }
0x1310   :  { %v3020_v53 = vadd.f32 %v3019_v50, %v3018_v28 }
0x1312   :  { %3021 = vadd.xlane.f32.xlu0 %v3020_v53 }
0x139f   :  { %v3022_v29 = vpop.xlane.xlu0 %3021 }
0x13a0   :  { %v3023_v30 = vrot.slane %v3022_v29, 4 }
0x13a2   :  { %v3024_v0 = vadd.f32 %v3023_v30, %v3022_v29 }
0x13a4   :  { %v3025_v2 = vrot.slane %v3024_v0, 2 }
0x13a6   :  { %v3026_v3 = vadd.f32 %v3025_v2, %v3024_v0 }
0x13a8   :  { %v3027_v33 = vrot.slane %v3026_v3, 1 }
0x13aa   :  { %v3028_v34 = vadd.f32 %v3027_v33, %v3026_v3 }
0x13ac   :  { %4063 = vpush %v3028_v34 }
0x13dd   :  { %s4064_s23 = spop %4063 }
0x13de   :  { %s3030_s14 = smul.f32 0.001953125, %s4064_s23 }
0x13e0   :  { %s3031_s16 = sadd.f32 1e-05, %s3030_s14 }
0x13e2   :  { %v3032_v35 = vstv %s3031_s16 }
0x13e3   :  { %4248 = vrsqrt.f32 %v3032_v35 }
0x13ed   :  { %v4249_v36 = vpop.eup %4248 }
0x13ee   :  { %4065 = vpush %v4249_v36 }
0x141f   :  { %s4066_s12 = spop %4065 }
0x1420   :  { %v3035_v37 = vstv %s4066_s12 }
0x1421   :  { %v3036_v38 = vmul.f32 %v3035_v37, %v3014_v20  ;;  %v3037_v39 = vmul.f32 %v3035_v37, %v3015_v22 }
0x1423   :  { %v3044_v26 = vmul.f32 %v3403_v23, %v3036_v38  ;;  %v3045_v27 = vmul.f32 %v3403_v23, %v3037_v39 }
0x1425   :  { %v3052_v13 = vadd.f32 %v3404_v12, %v3044_v26  ;;  %v3053_v40 = vadd.f32 %v3404_v12, %v3045_v27 }
0x1427   :  { %3054 = vst [vmem:[#allocation2] sm:$0xff] %v3052_v13  ;;  %3055 = vst [vmem:[#allocation2 + $0x8] sm:$0xff] %v3053_v40 }
0x1428   :  { %4263 = shalt.err (!%p4260_p4)
}
0x1429   :  { %s4264_s7 = scalar_lea.hbm %s5375_s26, 256 }
0x142a   :  { %p4265_p5 = scmp.ne.s32.totalorder %s5375_s26, %s4264_s7  ;;  %p4268_p6 = scmp.lt.u32.totalorder %s4264_s7, %s5375_s26 }
0x142c   :  { %p4270_p7 = pnand %p4268_p6, %p4265_p5 }
0x142e   :  { %4273 = shalt.err (!%p4270_p7)
}
0x142f   :  { %s4281_s0 = smov 128   ;;  %s4282_s9 = smov 8  }
0x1430   :  { %3067 = dma.vmem_to_hbm [thread:$0]  %s3062_s13, 256, %s5375_s26, [#allocation3], %s4281_s0, %s4281_s0, %s4282_s9  }
0x1431   :  { %4274 = dma.done.wait [#allocation3], 256  }
0x1432   :  { %4275 = vsyncadd [#allocation3], 4294967040 }
0x1433   :  { %3071 = vsyncpa [#allocation3], 1 }

</bundles_post_ra>
